<compile_context>
chip_gen: v7x
topology: tpu7x:2x2x1
jax: 0.10.0
libtpu: 0.0.40
codegen_flags: <defaults>
</compile_context>

<pallas_src>
import functools

import jax
import jax.numpy as jnp
from jax import lax
from jax.experimental import pallas as pl
from jax.experimental.pallas import tpu as pltpu


def _round_up(x, m):
    return (x + m - 1) // m * m


# -----------------------------------------------------------------------------
# Fused Conv2d + BatchNorm2d(eval) + ReLU kernel (implicit GEMM, stride 1).
# -----------------------------------------------------------------------------
def _conv_bn_relu_kernel(x_ref, w_ref, scale_ref, shift_ref, o_ref,
                         *, kh, kw, h_out, w_out):
    # x_ref:     (nb, h_out+kh-1, w_out+kw-1, cin_p)  bf16 padded NHWC window
    # w_ref:     (kh, kw, cin_p, cout_p)              bf16 weights
    # scale_ref: (1, cout_p) f32   gamma / sqrt(var+eps)          (0 on pad)
    # shift_ref: (1, cout_p) f32   beta + (bias - mean) * scale   (0 on pad)
    # o_ref:     (nb, h_out, w_out, cout_p) f32
    nb = x_ref.shape[0]
    cin = x_ref.shape[-1]
    cout = o_ref.shape[-1]
    m = nb * h_out * w_out

    x = x_ref[...]                                   # whole window, stays bf16
    acc = None
    for di in range(kh):                             # kh*kw shifted matmuls,
        for dj in range(kw):                         # f32 accumulation on MXU
            lhs = x[:, di:di + h_out, dj:dj + w_out, :].reshape(m, cin)
            d = jnp.dot(lhs, w_ref[di, dj], preferred_element_type=jnp.float32)
            acc = d if acc is None else acc + d

    y = acc * scale_ref[...] + shift_ref[...]        # f32 epilogue (v5e-safe)
    y = jnp.maximum(y, 0.0)
    o_ref[...] = y.reshape(nb, h_out, w_out, cout).astype(o_ref.dtype)


def _pick_batch_tile(n, h_out, w_out, target_rows):
    """Largest divisor nb of n with nb*h_out*w_out <= target_rows and >=2 grid
    steps when n >= 2 (keeps both v7x TensorCores busy)."""
    best = 1
    for nb in range(2, n + 1):
        if n % nb:
            continue
        if nb * h_out * w_out > target_rows:
            continue
        if n // nb < 2:
            continue
        best = nb
    return best


def basic_conv2d(x, weight, bias, gamma, beta, running_mean, running_var, *,
                 padding=0, stride=1, eps=1e-5,
                 compute_dtype=jnp.bfloat16, target_rows=1024,
                 vmem_limit_bytes=48 * 1024 * 1024):
    """Fused Conv2d + BatchNorm2d (inference) + ReLU.

    x:      (N, H, W, C_in)  NHWC float32
    weight: (C_out, C_in, KH, KW)  PyTorch OIHW layout
    Returns (N, H_out, W_out, C_out) NHWC float32.
    """
    assert stride == 1, "GoogLeNet's BasicConv2d only uses stride=1"
    n, h, w, c_in = x.shape
    c_out, c_in_w, kh, kw = weight.shape
    assert c_in_w == c_in
    h_out = h + 2 * padding - kh + 1
    w_out = w + 2 * padding - kw + 1

    # Lane-pad channels to multiples of 128: dense MXU contraction + dense stores.
    c_in_p = _round_up(c_in, 128)
    c_out_p = _round_up(c_out, 128)

    # Spatial zero-pad + channel pad; cast MXU inputs to bf16.  This is the only
    # pre-pass over the activation (no 9x/25x im2col blow-up in HBM).
    x_p = jnp.pad(x, ((0, 0), (padding, padding), (padding, padding),
                      (0, c_in_p - c_in))).astype(compute_dtype)

    # (C_out, C_in, KH, KW) -> (KH, KW, C_in_p, C_out_p), zero padded, bf16.
    w_r = jnp.transpose(weight, (2, 3, 1, 0))
    w_r = jnp.pad(w_r, ((0, 0), (0, 0), (0, c_in_p - c_in),
                        (0, c_out_p - c_out))).astype(compute_dtype)

    # Fold BN (running stats) + conv bias into per-channel scale/shift (f32).
    scale = gamma / jnp.sqrt(running_var + eps)
    shift = beta + (bias - running_mean) * scale
    scale_p = jnp.pad(scale, (0, c_out_p - c_out)).reshape(1, c_out_p).astype(jnp.float32)
    shift_p = jnp.pad(shift, (0, c_out_p - c_out)).reshape(1, c_out_p).astype(jnp.float32)

    nb = _pick_batch_tile(n, h_out, w_out, target_rows)
    grid = (n // nb,)

    kernel = functools.partial(_conv_bn_relu_kernel, kh=kh, kw=kw,
                               h_out=h_out, w_out=w_out)

    flops = 2 * n * h_out * w_out * kh * kw * c_in_p * c_out_p
    bytes_accessed = (x_p.size * x_p.dtype.itemsize
                      + w_r.size * w_r.dtype.itemsize
                      + n * h_out * w_out * c_out_p * 4)

    out = pl.pallas_call(
        kernel,
        out_shape=jax.ShapeDtypeStruct((n, h_out, w_out, c_out_p), jnp.float32),
        grid_spec=pltpu.PrefetchScalarGridSpec(
            num_scalar_prefetch=0,
            grid=grid,
            in_specs=[
                # Overlap-free full-image window per batch tile (auto-pipelined).
                pl.BlockSpec((nb, h_out + kh - 1, w_out + kw - 1, c_in_p),
                             lambda i: (i, 0, 0, 0)),
                # Full weight slab, resident across the grid.
                pl.BlockSpec((kh, kw, c_in_p, c_out_p), lambda i: (0, 0, 0, 0)),
                pl.BlockSpec((1, c_out_p), lambda i: (0, 0)),
                pl.BlockSpec((1, c_out_p), lambda i: (0, 0)),
            ],
            out_specs=pl.BlockSpec((nb, h_out, w_out, c_out_p),
                                   lambda i: (i, 0, 0, 0)),
        ),
        compiler_params=pltpu.CompilerParams(
            dimension_semantics=("parallel",),
            vmem_limit_bytes=vmem_limit_bytes),
        cost_estimate=pl.CostEstimate(flops=flops, transcendentals=0,
                                      bytes_accessed=bytes_accessed),
    )(x_p, w_r, scale_p, shift_p)

    # Drop padded output channels (XLA glue; could be avoided by carrying the
    # 128-padded channel layout across layers).
    return out[..., :c_out]


def apply_basic_conv2d(x, p, **kw):
    return basic_conv2d(x, p['weight'], p['bias'], p['gamma'], p['beta'],
                        p['running_mean'], p['running_var'],
                        padding=p['padding'], **kw)


# -----------------------------------------------------------------------------
# Non-conv glue (NHWC).
# TODO(synk): pooling and the tiny (N,1024)@(1024,10) head stay as XLA ops
# (memory-bound glue), not Pallas kernels.
# -----------------------------------------------------------------------------
def max_pool(x, *, window=3, stride=1, padding=1):
    return lax.reduce_window(
        x, -jnp.inf, lax.max,
        (1, window, window, 1), (1, stride, stride, 1),
        ((0, 0), (padding, padding), (padding, padding), (0, 0)))


# -----------------------------------------------------------------------------
# Parameter construction (matches the PyTorch module structure).
# -----------------------------------------------------------------------------
def _conv_params(key, c_in, c_out, k):
    kw_, kb, kg, kbe, km, kv = jax.random.split(key, 6)
    return dict(
        weight=0.1 * jax.random.normal(kw_, (c_out, c_in, k, k), jnp.float32),
        bias=0.1 * jax.random.normal(kb, (c_out,), jnp.float32),
        gamma=1.0 + 0.1 * jax.random.normal(kg, (c_out,), jnp.float32),
        beta=0.1 * jax.random.normal(kbe, (c_out,), jnp.float32),
        running_mean=0.1 * jax.random.normal(km, (c_out,), jnp.float32),
        running_var=jnp.abs(1.0 + 0.1 * jax.random.normal(kv, (c_out,), jnp.float32)),
        padding=(k - 1) // 2,        # GoogLeNet: k=1 -> pad 0, k=3 -> pad 1
    )


def init_inception(key, in_planes, n1x1, n3x3red, n3x3, n5x5red, n5x5, pool_planes):
    ks = jax.random.split(key, 7)
    return dict(
        b1=_conv_params(ks[0], in_planes, n1x1, 1),
        b2_1x1_a=_conv_params(ks[1], in_planes, n3x3red, 1),
        b2_3x3_b=_conv_params(ks[2], n3x3red, n3x3, 3),
        b3_1x1_a=_conv_params(ks[3], in_planes, n5x5red, 1),
        b3_3x3_b=_conv_params(ks[4], n5x5red, n5x5, 3),
        b3_3x3_c=_conv_params(ks[5], n5x5, n5x5, 3),
        b4_1x1=_conv_params(ks[6], in_planes, pool_planes, 1),
    )


def inception(x, p):
    y1 = apply_basic_conv2d(x, p['b1'])
    y2 = apply_basic_conv2d(apply_basic_conv2d(x, p['b2_1x1_a']), p['b2_3x3_b'])
    y3 = apply_basic_conv2d(
        apply_basic_conv2d(apply_basic_conv2d(x, p['b3_1x1_a']), p['b3_3x3_b']),
        p['b3_3x3_c'])
    y4 = apply_basic_conv2d(max_pool(x, stride=1), p['b4_1x1'])
    return jnp.concatenate([y1, y2, y3, y4], axis=-1)   # NHWC channel concat


_GOOGLENET_CFG = dict(
    l3a=(192, 64, 96, 128, 16, 32, 32),
    l3b=(256, 128, 128, 192, 32, 96, 64),
    l4a=(480, 192, 96, 208, 16, 48, 64),
    l4b=(512, 160, 112, 224, 24, 64, 64),
    l4c=(512, 128, 128, 256, 24, 64, 64),
    l4d=(512, 112, 144, 288, 32, 64, 64),
    l4e=(528, 256, 160, 320, 32, 128, 128),
    l5a=(832, 256, 160, 320, 32, 128, 128),
    l5b=(832, 384, 192, 384, 48, 128, 128),
)


def init_googlenet(key, num_class=10):
    names = list(_GOOGLENET_CFG)
    ks = jax.random.split(key, len(names) + 2)
    params = dict(pre_layers=_conv_params(ks[0], 3, 192, 3))
    for k_, name in zip(ks[1:-1], names):
        params[name] = init_inception(k_, *_GOOGLENET_CFG[name])
    kw_, _ = jax.random.split(ks[-1])
    params['linear'] = dict(
        weight=0.05 * jax.random.normal(kw_, (1024, num_class), jnp.float32),
        bias=jnp.zeros((num_class,), jnp.float32))
    return params


def googlenet_forward(x_nchw, params):
    """Full GoogLeNet forward (CIFAR variant, 32x32 input). NCHW in, logits out."""
    x = jnp.transpose(x_nchw, (0, 2, 3, 1))      # NCHW -> NHWC once, at the boundary
    x = apply_basic_conv2d(x, params['pre_layers'])
    x = inception(x, params['l3a'])
    x = inception(x, params['l3b'])
    x = max_pool(x, stride=2)
    for name in ('l4a', 'l4b', 'l4c', 'l4d', 'l4e'):
        x = inception(x, params[name])
    x = max_pool(x, stride=2)
    x = inception(x, params['l5a'])
    x = inception(x, params['l5b'])
    x = jnp.mean(x, axis=(1, 2))                 # AvgPool2d(8) on the final 8x8 map
    return x @ params['linear']['weight'] + params['linear']['bias']


# -----------------------------------------------------------------------------
# Pure-JAX references (f32).
# -----------------------------------------------------------------------------
def _ref_basic_conv2d(x_nhwc, p, eps=1e-5):
    pad = p['padding']
    y = lax.conv_general_dilated(
        x_nhwc, jnp.transpose(p['weight'], (2, 3, 1, 0)),
        window_strides=(1, 1),
        padding=((pad, pad), (pad, pad)),
        dimension_numbers=('NHWC', 'HWIO', 'NHWC'))
    y = y + p['bias']
    scale = p['gamma'] / jnp.sqrt(p['running_var'] + eps)
    y = (y - p['running_mean']) * scale + p['beta']
    return jnp.maximum(y, 0.0)


def _ref_inception(x, p):
    y1 = _ref_basic_conv2d(x, p['b1'])
    y2 = _ref_basic_conv2d(_ref_basic_conv2d(x, p['b2_1x1_a']), p['b2_3x3_b'])
    y3 = _ref_basic_conv2d(
        _ref_basic_conv2d(_ref_basic_conv2d(x, p['b3_1x1_a']), p['b3_3x3_b']),
        p['b3_3x3_c'])
    y4 = _ref_basic_conv2d(max_pool(x, stride=1), p['b4_1x1'])
    return jnp.concatenate([y1, y2, y3, y4], axis=-1)


if __name__ == "__main__":
    key = jax.random.PRNGKey(0)
    k_x, k_c3, k_c1, k_inc = jax.random.split(key, 4)

    # Small shapes (toy GoogLeNet blocks): N=2, C_in=4, 16x16 spatial.
    # bf16 MXU inputs -> tolerance loosened vs. the f32 reference (see review).
    N, C_in, H, W = 2, 4, 16, 16
    TOL = 5e-2
    x_nchw = jax.random.normal(k_x, (N, C_in, H, W), jnp.float32)   # PyTorch boundary
    x_nhwc = jnp.transpose(x_nchw, (0, 2, 3, 1))

    # --- BasicConv2d, 3x3, padding=1 (implicit GEMM, 9 shifted taps) ---
    p3 = _conv_params(k_c3, C_in, 8, 3)
    conv3 = jax.jit(lambda xx: apply_basic_conv2d(xx, p3))
    out3 = jax.block_until_ready(conv3(x_nhwc))
    ref3 = _ref_basic_conv2d(x_nhwc, p3)
    assert out3.shape == (N, H, W, 8), out3.shape
    assert jnp.allclose(out3, ref3, atol=TOL, rtol=TOL), \
        float(jnp.max(jnp.abs(out3 - ref3)))

    # --- BasicConv2d, 1x1 (direct channel matmul, no im2col, single tap) ---
    p1 = _conv_params(k_c1, C_in, 16, 1)
    conv1 = jax.jit(lambda xx: apply_basic_conv2d(xx, p1))
    out1 = jax.block_until_ready(conv1(x_nhwc))
    ref1 = _ref_basic_conv2d(x_nhwc, p1)
    assert out1.shape == (N, H, W, 16), out1.shape
    assert jnp.allclose(out1, ref1, atol=TOL, rtol=TOL), \
        float(jnp.max(jnp.abs(out1 - ref1)))

    # --- One Inception block at small widths ---
    pinc = init_inception(k_inc, C_in, 8, 8, 8, 4, 4, 8)
    inc = jax.jit(lambda xx: inception(xx, pinc))
    out_inc = jax.block_until_ready(inc(x_nhwc))
    ref_inc = _ref_inception(x_nhwc, pinc)
    assert out_inc.shape == (N, H, W, 8 + 8 + 4 + 8), out_inc.shape
    assert jnp.allclose(out_inc, ref_inc, atol=TOL, rtol=TOL), \
        float(jnp.max(jnp.abs(out_inc - ref_inc)))

    # NOTE: the full-size GoogLeNet forward (init_googlenet / googlenet_forward,
    # 32x32 NCHW input) is provided above and composes the same Pallas kernel;
    # the smoke test sticks to small shapes to keep compile time bounded.
    print("KERNEL_OK")
</pallas_src>

<mosaic_0001>
module attributes {stable_mosaic.version = 11 : i64} {
  func.func @_conv_bn_relu_kernel(%arg0: i32, %arg1: memref<1x18x18x128xbf16, #tpu.memory_space<vmem>>, %arg2: memref<3x3x128x128xbf16, #tpu.memory_space<vmem>>, %arg3: memref<1x128xf32, #tpu.memory_space<vmem>>, %arg4: memref<1x128xf32, #tpu.memory_space<vmem>>, %arg5: memref<1x16x16x128xf32, #tpu.memory_space<vmem>>) attributes {dimension_semantics = [#tpu.dimension_semantics<parallel>], iteration_bounds = array<i64: 2>, scalar_prefetch = 0 : i64, scratch_operands = 0 : i64, tpu.core_type = #tpu.core_type<tc>, window_params = [{transform_indices = @transform_0, window_bounds = array<i64: 1, 18, 18, 128>}, {pipeline_mode = #tpu.pipeline_mode<synchronous>, transform_indices = @transform_1, window_bounds = array<i64: 3, 3, 128, 128>}, {pipeline_mode = #tpu.pipeline_mode<synchronous>, transform_indices = @transform_2, window_bounds = array<i64: 1, 128>}, {pipeline_mode = #tpu.pipeline_mode<synchronous>, transform_indices = @transform_3, window_bounds = array<i64: 1, 128>}, {transform_indices = @transform_4, window_bounds = array<i64: 1, 16, 16, 128>}]} {
    %c0 = arith.constant 0 : index
    %c0_0 = arith.constant 0 : index
    %c0_1 = arith.constant 0 : index
    %c0_2 = arith.constant 0 : index
    %0 = vector.load %arg1[%c0, %c0_0, %c0_1, %c0_2] : memref<1x18x18x128xbf16, #tpu.memory_space<vmem>>, vector<1x18x18x128xbf16>
    %1 = vector.extract_strided_slice %0 {offsets = [0, 0, 0, 0], sizes = [1, 16, 16, 128], strides = [1, 1, 1, 1]} : vector<1x18x18x128xbf16> to vector<1x16x16x128xbf16>
    %2 = vector.shape_cast %1 : vector<1x16x16x128xbf16> to vector<256x128xbf16>
    %c0_3 = arith.constant 0 : index
    %c0_4 = arith.constant 0 : index
    %c0_5 = arith.constant 0 : index
    %c0_6 = arith.constant 0 : index
    %3 = vector.load %arg2[%c0_3, %c0_4, %c0_5, %c0_6] : memref<3x3x128x128xbf16, #tpu.memory_space<vmem>>, vector<1x1x128x128xbf16>
    %4 = vector.shape_cast %3 : vector<1x1x128x128xbf16> to vector<128x128xbf16>
    %cst = arith.constant dense<0.000000e+00> : vector<256x128xf32>
    %5 = tpu.matmul %2, %4, %cst {dimension_numbers = #tpu.dot_dimension_numbers<[1], [0], [0], [1], [0, 0, 1, 1], [], []>} : vector<256x128xbf16>, vector<128x128xbf16>, vector<256x128xf32> -> vector<256x128xf32>
    %6 = vector.extract_strided_slice %0 {offsets = [0, 0, 1, 0], sizes = [1, 16, 16, 128], strides = [1, 1, 1, 1]} : vector<1x18x18x128xbf16> to vector<1x16x16x128xbf16>
    %7 = vector.shape_cast %6 : vector<1x16x16x128xbf16> to vector<256x128xbf16>
    %c0_7 = arith.constant 0 : index
    %c1 = arith.constant 1 : index
    %c0_8 = arith.constant 0 : index
    %c0_9 = arith.constant 0 : index
    %8 = vector.load %arg2[%c0_7, %c1, %c0_8, %c0_9] : memref<3x3x128x128xbf16, #tpu.memory_space<vmem>>, vector<1x1x128x128xbf16>
    %9 = vector.shape_cast %8 : vector<1x1x128x128xbf16> to vector<128x128xbf16>
    %cst_10 = arith.constant dense<0.000000e+00> : vector<256x128xf32>
    %10 = tpu.matmul %7, %9, %cst_10 {dimension_numbers = #tpu.dot_dimension_numbers<[1], [0], [0], [1], [0, 0, 1, 1], [], []>} : vector<256x128xbf16>, vector<128x128xbf16>, vector<256x128xf32> -> vector<256x128xf32>
    %11 = arith.addf %5, %10 : vector<256x128xf32>
    %12 = vector.extract_strided_slice %0 {offsets = [0, 0, 2, 0], sizes = [1, 16, 16, 128], strides = [1, 1, 1, 1]} : vector<1x18x18x128xbf16> to vector<1x16x16x128xbf16>
    %13 = vector.shape_cast %12 : vector<1x16x16x128xbf16> to vector<256x128xbf16>
    %c0_11 = arith.constant 0 : index
    %c2 = arith.constant 2 : index
    %c0_12 = arith.constant 0 : index
    %c0_13 = arith.constant 0 : index
    %14 = vector.load %arg2[%c0_11, %c2, %c0_12, %c0_13] : memref<3x3x128x128xbf16, #tpu.memory_space<vmem>>, vector<1x1x128x128xbf16>
    %15 = vector.shape_cast %14 : vector<1x1x128x128xbf16> to vector<128x128xbf16>
    %cst_14 = arith.constant dense<0.000000e+00> : vector<256x128xf32>
    %16 = tpu.matmul %13, %15, %cst_14 {dimension_numbers = #tpu.dot_dimension_numbers<[1], [0], [0], [1], [0, 0, 1, 1], [], []>} : vector<256x128xbf16>, vector<128x128xbf16>, vector<256x128xf32> -> vector<256x128xf32>
    %17 = arith.addf %11, %16 : vector<256x128xf32>
    %18 = vector.extract_strided_slice %0 {offsets = [0, 1, 0, 0], sizes = [1, 16, 16, 128], strides = [1, 1, 1, 1]} : vector<1x18x18x128xbf16> to vector<1x16x16x128xbf16>
    %19 = vector.shape_cast %18 : vector<1x16x16x128xbf16> to vector<256x128xbf16>
    %c1_15 = arith.constant 1 : index
    %c0_16 = arith.constant 0 : index
    %c0_17 = arith.constant 0 : index
    %c0_18 = arith.constant 0 : index
    %20 = vector.load %arg2[%c1_15, %c0_16, %c0_17, %c0_18] : memref<3x3x128x128xbf16, #tpu.memory_space<vmem>>, vector<1x1x128x128xbf16>
    %21 = vector.shape_cast %20 : vector<1x1x128x128xbf16> to vector<128x128xbf16>
    %cst_19 = arith.constant dense<0.000000e+00> : vector<256x128xf32>
    %22 = tpu.matmul %19, %21, %cst_19 {dimension_numbers = #tpu.dot_dimension_numbers<[1], [0], [0], [1], [0, 0, 1, 1], [], []>} : vector<256x128xbf16>, vector<128x128xbf16>, vector<256x128xf32> -> vector<256x128xf32>
    %23 = arith.addf %17, %22 : vector<256x128xf32>
    %24 = vector.extract_strided_slice %0 {offsets = [0, 1, 1, 0], sizes = [1, 16, 16, 128], strides = [1, 1, 1, 1]} : vector<1x18x18x128xbf16> to vector<1x16x16x128xbf16>
    %25 = vector.shape_cast %24 : vector<1x16x16x128xbf16> to vector<256x128xbf16>
    %c1_20 = arith.constant 1 : index
    %c1_21 = arith.constant 1 : index
    %c0_22 = arith.constant 0 : index
    %c0_23 = arith.constant 0 : index
    %26 = vector.load %arg2[%c1_20, %c1_21, %c0_22, %c0_23] : memref<3x3x128x128xbf16, #tpu.memory_space<vmem>>, vector<1x1x128x128xbf16>
    %27 = vector.shape_cast %26 : vector<1x1x128x128xbf16> to vector<128x128xbf16>
    %cst_24 = arith.constant dense<0.000000e+00> : vector<256x128xf32>
    %28 = tpu.matmul %25, %27, %cst_24 {dimension_numbers = #tpu.dot_dimension_numbers<[1], [0], [0], [1], [0, 0, 1, 1], [], []>} : vector<256x128xbf16>, vector<128x128xbf16>, vector<256x128xf32> -> vector<256x128xf32>
    %29 = arith.addf %23, %28 : vector<256x128xf32>
    %30 = vector.extract_strided_slice %0 {offsets = [0, 1, 2, 0], sizes = [1, 16, 16, 128], strides = [1, 1, 1, 1]} : vector<1x18x18x128xbf16> to vector<1x16x16x128xbf16>
    %31 = vector.shape_cast %30 : vector<1x16x16x128xbf16> to vector<256x128xbf16>
    %c1_25 = arith.constant 1 : index
    %c2_26 = arith.constant 2 : index
    %c0_27 = arith.constant 0 : index
    %c0_28 = arith.constant 0 : index
    %32 = vector.load %arg2[%c1_25, %c2_26, %c0_27, %c0_28] : memref<3x3x128x128xbf16, #tpu.memory_space<vmem>>, vector<1x1x128x128xbf16>
    %33 = vector.shape_cast %32 : vector<1x1x128x128xbf16> to vector<128x128xbf16>
    %cst_29 = arith.constant dense<0.000000e+00> : vector<256x128xf32>
    %34 = tpu.matmul %31, %33, %cst_29 {dimension_numbers = #tpu.dot_dimension_numbers<[1], [0], [0], [1], [0, 0, 1, 1], [], []>} : vector<256x128xbf16>, vector<128x128xbf16>, vector<256x128xf32> -> vector<256x128xf32>
    %35 = arith.addf %29, %34 : vector<256x128xf32>
    %36 = vector.extract_strided_slice %0 {offsets = [0, 2, 0, 0], sizes = [1, 16, 16, 128], strides = [1, 1, 1, 1]} : vector<1x18x18x128xbf16> to vector<1x16x16x128xbf16>
    %37 = vector.shape_cast %36 : vector<1x16x16x128xbf16> to vector<256x128xbf16>
    %c2_30 = arith.constant 2 : index
    %c0_31 = arith.constant 0 : index
    %c0_32 = arith.constant 0 : index
    %c0_33 = arith.constant 0 : index
    %38 = vector.load %arg2[%c2_30, %c0_31, %c0_32, %c0_33] : memref<3x3x128x128xbf16, #tpu.memory_space<vmem>>, vector<1x1x128x128xbf16>
    %39 = vector.shape_cast %38 : vector<1x1x128x128xbf16> to vector<128x128xbf16>
    %cst_34 = arith.constant dense<0.000000e+00> : vector<256x128xf32>
    %40 = tpu.matmul %37, %39, %cst_34 {dimension_numbers = #tpu.dot_dimension_numbers<[1], [0], [0], [1], [0, 0, 1, 1], [], []>} : vector<256x128xbf16>, vector<128x128xbf16>, vector<256x128xf32> -> vector<256x128xf32>
    %41 = arith.addf %35, %40 : vector<256x128xf32>
    %42 = vector.extract_strided_slice %0 {offsets = [0, 2, 1, 0], sizes = [1, 16, 16, 128], strides = [1, 1, 1, 1]} : vector<1x18x18x128xbf16> to vector<1x16x16x128xbf16>
    %43 = vector.shape_cast %42 : vector<1x16x16x128xbf16> to vector<256x128xbf16>
    %c2_35 = arith.constant 2 : index
    %c1_36 = arith.constant 1 : index
    %c0_37 = arith.constant 0 : index
    %c0_38 = arith.constant 0 : index
    %44 = vector.load %arg2[%c2_35, %c1_36, %c0_37, %c0_38] : memref<3x3x128x128xbf16, #tpu.memory_space<vmem>>, vector<1x1x128x128xbf16>
    %45 = vector.shape_cast %44 : vector<1x1x128x128xbf16> to vector<128x128xbf16>
    %cst_39 = arith.constant dense<0.000000e+00> : vector<256x128xf32>
    %46 = tpu.matmul %43, %45, %cst_39 {dimension_numbers = #tpu.dot_dimension_numbers<[1], [0], [0], [1], [0, 0, 1, 1], [], []>} : vector<256x128xbf16>, vector<128x128xbf16>, vector<256x128xf32> -> vector<256x128xf32>
    %47 = arith.addf %41, %46 : vector<256x128xf32>
    %48 = vector.extract_strided_slice %0 {offsets = [0, 2, 2, 0], sizes = [1, 16, 16, 128], strides = [1, 1, 1, 1]} : vector<1x18x18x128xbf16> to vector<1x16x16x128xbf16>
    %49 = vector.shape_cast %48 : vector<1x16x16x128xbf16> to vector<256x128xbf16>
    %c2_40 = arith.constant 2 : index
    %c2_41 = arith.constant 2 : index
    %c0_42 = arith.constant 0 : index
    %c0_43 = arith.constant 0 : index
    %50 = vector.load %arg2[%c2_40, %c2_41, %c0_42, %c0_43] : memref<3x3x128x128xbf16, #tpu.memory_space<vmem>>, vector<1x1x128x128xbf16>
    %51 = vector.shape_cast %50 : vector<1x1x128x128xbf16> to vector<128x128xbf16>
    %cst_44 = arith.constant dense<0.000000e+00> : vector<256x128xf32>
    %52 = tpu.matmul %49, %51, %cst_44 {dimension_numbers = #tpu.dot_dimension_numbers<[1], [0], [0], [1], [0, 0, 1, 1], [], []>} : vector<256x128xbf16>, vector<128x128xbf16>, vector<256x128xf32> -> vector<256x128xf32>
    %53 = arith.addf %47, %52 : vector<256x128xf32>
    %c0_45 = arith.constant 0 : index
    %c0_46 = arith.constant 0 : index
    %54 = vector.load %arg3[%c0_45, %c0_46] : memref<1x128xf32, #tpu.memory_space<vmem>>, vector<1x128xf32>
    %55 = vector.broadcast %54 : vector<1x128xf32> to vector<256x128xf32>
    %56 = arith.mulf %53, %55 : vector<256x128xf32>
    %c0_47 = arith.constant 0 : index
    %c0_48 = arith.constant 0 : index
    %57 = vector.load %arg4[%c0_47, %c0_48] : memref<1x128xf32, #tpu.memory_space<vmem>>, vector<1x128xf32>
    %58 = vector.broadcast %57 : vector<1x128xf32> to vector<256x128xf32>
    %59 = arith.addf %56, %58 : vector<256x128xf32>
    %cst_49 = arith.constant 0.000000e+00 : f32
    %60 = vector.broadcast %cst_49 : f32 to vector<256x128xf32>
    %61 = arith.maximumf %59, %60 : vector<256x128xf32>
    %62 = vector.shape_cast %61 : vector<256x128xf32> to vector<1x16x16x128xf32>
    %c0_50 = arith.constant 0 : index
    %c0_51 = arith.constant 0 : index
    %c0_52 = arith.constant 0 : index
    %c0_53 = arith.constant 0 : index
    %63 = vector.load %arg5[%c0_50, %c0_51, %c0_52, %c0_53] : memref<1x16x16x128xf32, #tpu.memory_space<vmem>>, vector<1x16x16x128xf32>
    tpu.vector_store %arg5[%c0_50, %c0_51, %c0_52, %c0_53], %62 {strides = array<i32>} : memref<1x16x16x128xf32, #tpu.memory_space<vmem>>, vector<1x16x16x128xf32>,
    return
  }
  func.func @transform_0(%arg0: i32) -> (i32, i32, i32, i32) {
    %c0_i32 = arith.constant 0 : i32
    %c0_i32_0 = arith.constant 0 : i32
    %c0_i32_1 = arith.constant 0 : i32
    %c0_i32_2 = arith.constant 0 : i32
    return %arg0, %c0_i32, %c0_i32_0, %c0_i32_1 : i32, i32, i32, i32
  }
  func.func @transform_1(%arg0: i32) -> (i32, i32, i32, i32) {
    %c0_i32 = arith.constant 0 : i32
    %c0_i32_0 = arith.constant 0 : i32
    %c0_i32_1 = arith.constant 0 : i32
    %c0_i32_2 = arith.constant 0 : i32
    %c0_i32_3 = arith.constant 0 : i32
    return %c0_i32, %c0_i32_0, %c0_i32_1, %c0_i32_2 : i32, i32, i32, i32
  }
  func.func @transform_2(%arg0: i32) -> (i32, i32) {
    %c0_i32 = arith.constant 0 : i32
    %c0_i32_0 = arith.constant 0 : i32
    %c0_i32_1 = arith.constant 0 : i32
    return %c0_i32, %c0_i32_0 : i32, i32
  }
  func.func @transform_3(%arg0: i32) -> (i32, i32) {
    %c0_i32 = arith.constant 0 : i32
    %c0_i32_0 = arith.constant 0 : i32
    %c0_i32_1 = arith.constant 0 : i32
    return %c0_i32, %c0_i32_0 : i32, i32
  }
  func.func @transform_4(%arg0: i32) -> (i32, i32, i32, i32) {
    %c0_i32 = arith.constant 0 : i32
    %c0_i32_0 = arith.constant 0 : i32
    %c0_i32_1 = arith.constant 0 : i32
    %c0_i32_2 = arith.constant 0 : i32
    return %arg0, %c0_i32, %c0_i32_0, %c0_i32_1 : i32, i32, i32, i32
  }
}

</mosaic_0001>

<bundles_post_ra>
// kernel: _lambda_.1
= control target key start
LH: loop header
LB: loop body
LE: loop exit
PB: predicated region body
PF: predicated region fallthrough
CT: control target
= control target key end

     0   :  { %s4895_s15 = smov 0   ;;  %s6018_s0 = inlined_call_operand.vmem [shape: bf16[2,18,18,128], index: 0, kind: input, shape index: {}]   ;;  %s6019_s1 = inlined_call_operand.vmem [shape: bf16[3,3,128,128], index: 1, kind: input, shape index: {}]   ;;  %s6020_s2 = inlined_call_operand.vmem [shape: f32[1,128], index: 2, kind: input, shape index: {}]   ;;  %s6021_s3 = inlined_call_operand.vmem [shape: f32[1,128], index: 3, kind: input, shape index: {}]   ;;  %s6022_s4 = inlined_call_operand.vmem [shape: f32[2,16,16,128], index: 4, kind: output, shape index: {}]  }
   0x1 LB: > { %s3541_s16 = sadd.s32 4294967295, %s4868_s15   ;;  %p3545_p0 = scmp.ge.s32.totalorder %s4868_s15, 1  ;;  %s4868_s15 = sphi %s4895_s15, %s14_s15  }
   0x2   : > { %p162_p1 = scmp.lt.s32.totalorder %s4868_s15, 3 }
   0x4   : > { %p163_p2 = pnand %p3545_p0, %p162_p1 }
   0x6   : > { %166 = sbr.rel (%p163_p2) target bundleno = 561 (0x231), region = 36 }
   0xd   : > { %v4755_v0 = vld [vmem:[%s6019_s1 + $0x40] sm:$0xff]   ;;  %p188_p3 = scmp.lt.s32.totalorder %s3541_s16, 1  ;;  %v4757_v2 = vld [vmem:[%s6019_s1 + $0x48] sm:$0xff]   ;;  %v4759_v4 = vld [vmem:[%s6019_s1 + $0x50] sm:$0xff]   ;;  %vm269_vm0 = vsmask.f32 3328 }
   0xe   : > { %v4756_v1 = vld [vmem:[%s6019_s1 + $0x100] sm:$0xff]   ;;  %4042 = vmatprep.subr.bf16.mxu1 %v4755_v0  ;;  %v4758_v3 = vld [vmem:[%s6019_s1 + $0x108] sm:$0xff]   ;;  %v4760_v5 = vld [vmem:[%s6019_s1 + $0x110] sm:$0xff]   ;;  %vm270_vm1 = vsmask.f32 7440  ;;  %vm1267_vm3 = vcmask 1042432  }
   0xf   : > { %4234 = vmatprep.subr.bf16.mxu0 %v4756_v1  ;;  %4043 = vmatpush3.bf16.msra.mxu1 %v4755_v0  ;;  %s6067_s16 = smov (!%p188_p3, %s3541_s16), 1  ;;  %v4761_v6 = vld [vmem:[%s6019_s1 + $0x58] sm:$0xff]   ;;  %v4763_v8 = vld [vmem:[%s6019_s1 + $0x60] sm:$0xff]   ;;  %v4765_v10 = vld [vmem:[%s6019_s1 + $0x68] sm:$0xff]   ;;  %vm1268_vm4 = vcmask 1046532  }
  0x10   : > { %4235 = vmatpush3.bf16.msra.mxu0 %v4756_v1  ;;  %4044 = vmatprep.subr.bf16.mxu1 %v4757_v2  ;;  %v4762_v7 = vld [vmem:[%s6019_s1 + $0x118] sm:$0xff]   ;;  %s4746_s7 = smul.u32 216, %s6067_s16  ;;  %v4764_v9 = vld [vmem:[%s6019_s1 + $0x120] sm:$0xff]   ;;  %v4766_v11 = vld [vmem:[%s6019_s1 + $0x128] sm:$0xff]   ;;  %s3825_s22 = sshll.u32 %s6067_s16, 8 }
  0x11   : > { %4236 = vmatprep.subr.bf16.mxu0 %v4758_v3  ;;  %v4767_v17 = vld [vmem:[%s6019_s1 + $0x70] sm:$0xff]   ;;  %v4769_v36 = vld [vmem:[%s6019_s1 + $0x78] sm:$0xff]   ;;  %vm4984_vm2 = vmor %vm269_vm0, %vm270_vm1  ;;  %s5915_s25 = scalar_lea.vmem %s6022_s4, %s3825_s22 }
  0x12   : > { %s4939_s14 = scalar_lea.vmem %s6018_s0, %s4746_s7  ;;  %v4768_v31 = vld [vmem:[%s6019_s1 + $0x130] sm:$0xff]   ;;  %v4770_v53 = vld [vmem:[%s6019_s1 + $0x138] sm:$0xff]   ;;  %v4771_v1 = vld [vmem:[%s6019_s1] sm:$0xff]  }
  0x13   : > { %4045 = vmatpush3.bf16.msra.mxu1 %v4757_v2  ;;  %v4948_v12 = vld [vmem:[%s4939_s14] sm:$0xf]  ;;  %v4951_v13 = vld [vmem:[%s4939_s14 + $0x4] sm:$0xf]  ;;  %v201_v14 = vld [vmem:[%s4939_s14 + $0x8] sm:$0x1] }
  0x14   : > { %4237 = vmatpush3.bf16.msra.mxu0 %v4758_v3  ;;  %4046 = vmatprep.subr.bf16.mxu1 %v4759_v4  ;;  %v273_v15 = vshrl.u32 %v4948_v12, 16  ;;  %v276_v16 = vshll.u32 %v4948_v12, 16  ;;  %v282_v18 = vshll.u32 %v4951_v13, 16  ;;  %v286_v19 = vshrl.u32 %v4951_v13, 16  ;;  %v4962_v21 = vld [vmem:[%s4939_s14 + $0xc] sm:$0xf]  ;;  %vm5191_vm5 = vmor %vm1267_vm3, %vm1268_vm4 }
  0x15   : > { %4238 = vmatprep.subr.bf16.mxu0 %v4760_v5  ;;  %v292_v20 = vshll.u32 %v201_v14, 16  ;;  %v4965_v24 = vld [vmem:[%s4939_s14 + $0x10] sm:$0xf]  ;;  %v4968_v25 = vld [vmem:[%s4939_s14 + $0x14] sm:$0x1]  ;;  %v297_v30 = vshrl.u32 %v4962_v21, 16 }
  0x16   : > { %v275_v22 = vrot.slane %v273_v15, 4  ;;  %v278_v23 = vrot.slane %v276_v16, 5  ;;  %v284_v27 = vrot.slane %v282_v18, 5  ;;  %v288_v28 = vrot.slane %v286_v19, 4  ;;  %v4990_v41 = vld [vmem:[%s4939_s14 + $0x18] sm:$0xf] }
  0x17   : > { %4047 = vmatpush3.bf16.msra.mxu1 %v4759_v4  ;;  %v294_v29 = vrot.slane %v292_v20, 5  ;;  %v300_v33 = vshll.u32 %v4962_v21, 16  ;;  %v306_v34 = vshll.u32 %v4965_v24, 16  ;;  %v310_v35 = vshrl.u32 %v4965_v24, 16  ;;  %v4993_v42 = vld [vmem:[%s4939_s14 + $0x1c] sm:$0xf] }
  0x18   : > { %4239 = vmatpush3.bf16.msra.mxu0 %v4760_v5  ;;  %4048 = vmatprep.subr.bf16.mxu1 %v4761_v6  ;;  %v279_v32 = vor.u32 %v278_v23, %v275_v22  ;;  %v289_v38 = vor.u32 %v288_v28, %v284_v27  ;;  %v299_v39 = vrot.slane %v297_v30, 4  ;;  %v316_v40 = vshll.u32 %v4968_v25, 16  ;;  %v5000_v48 = vld [vmem:[%s4939_s14 + $0x20] sm:$0x1]  ;;  %v5017_v3 = vld [vmem:[%s4939_s14 + $0x24] sm:$0xf] }
  0x19   : > { %4240 = vmatprep.subr.bf16.mxu0 %v4762_v7  ;;  %v4997_v43 = vcombine.low %v4962_v21, %v4965_v24  ;;  %v302_v45 = vrot.slane %v300_v33, 5  ;;  %v308_v46 = vrot.slane %v306_v34, 5  ;;  %v312_v47 = vrot.slane %v310_v35, 4  ;;  %v5032_v14 = vld [vmem:[%s4939_s14 + $0x2c] sm:$0x1]  ;;  %v4861_v37 = vld [vmem:[%s6019_s1 + $0x138] sm:$0xff]  }
  0x1a   : > { %v280_v44 = vrot.slane %v279_v32, 4  ;;  %v290_v49 = vrot.slane %v289_v38, 4  ;;  %v318_v50 = vrot.slane %v316_v40, 5  ;;  %v321_v51 = vshrl.u32 %v4990_v41, 16  ;;  %v5037_v22 = vld [vmem:[%s4939_s14 + $0x30] sm:$0xf] }
  0x1b   : > { %4049 = vmatpush3.bf16.msra.mxu1 %v4761_v6  ;;  %v324_v52 = vshll.u32 %v4990_v41, 16  ;;  %v303_v55 = vor.u32 %v302_v45, %v299_v39  ;;  %v313_v56 = vor.u32 %v312_v47, %v308_v46  ;;  %v330_v57 = vshll.u32 %v4993_v42, 16  ;;  %v5042_v30 = vld [vmem:[%s4939_s14 + $0x34] sm:$0xf]  ;;  %v4774_v34 = vld [vmem:[%s6019_s1 + $0x8] sm:$0xff]  }
  0x1c   : > { %4241 = vmatpush3.bf16.msra.mxu0 %v4762_v7  ;;  %4050 = vmatprep.subr.bf16.mxu1 %v4763_v8  ;;  %v285_v54 = vsel %vm4984_vm2, %v280_v44, %v284_v27  ;;  %v295_v58 = vsel %vm4984_vm2, %v290_v49, %v294_v29  ;;  %v323_v59 = vrot.slane %v321_v51, 4  ;;  %v334_v61 = vshrl.u32 %v4993_v42, 16  ;;  %v5051_v35 = vld [vmem:[%s4939_s14 + $0x38] sm:$0x1] }
  0x1d   : > { %4242 = vmatprep.subr.bf16.mxu0 %v4764_v9  ;;  %v326_v60 = vrot.slane %v324_v52, 5  ;;  %v3565_v62 = vcombine.low %v285_v54, %v295_v58  ;;  %v304_v63 = vrot.slane %v303_v55, 4  ;;  %v314_v0 = vrot.slane %v313_v56, 4  ;;  %v5066_v58 = vld [vmem:[%s4939_s14 + $0x3c] sm:$0xf] }
  0x1e   : > { %v332_v2 = vrot.slane %v330_v57, 5  ;;  %v336_v5 = vrot.slane %v334_v61, 4  ;;  %v340_v6 = vshll.u32 %v5000_v48, 16  ;;  %v1289_v7 = vrot.slane %v5000_v48, 5 }
  0x1f   : > { %4051 = vmatpush3.bf16.msra.mxu1 %v4763_v8  ;;  %v327_v4 = vor.u32 %v326_v60, %v323_v59  ;;  %v4772_v8 = vld [vmem:[%s6019_s1 + $0x140] sm:$0xff]   ;;  %4058 = vmatprep.mubr.bf16.mxu1 %v3565_v62  ;;  %v345_v15 = vshrl.u32 %v5017_v3, 16  ;;  %v348_v16 = vshll.u32 %v5017_v3, 16  ;;  %v364_v33 = vshll.u32 %v5032_v14, 16  ;;  %v4777_v59 = vld [vmem:[%s6019_s1 + $0x10] sm:$0xff]  }
  0x20   : > { %4243 = vmatpush3.bf16.msra.mxu0 %v4764_v9  ;;  %4052 = vmatprep.subr.bf16.mxu1 %v4765_v10  ;;  %v5025_v9 = vld [vmem:[%s4939_s14 + $0x28] sm:$0xf]  ;;  %v337_v19 = vor.u32 %v336_v5, %v332_v2  ;;  %v342_v20 = vrot.slane %v340_v6, 5  ;;  %v372_v44 = vshll.u32 %v5037_v22, 16  ;;  %v382_v56 = vshrl.u32 %v5042_v30, 16 }
  0x21   : > { %4244 = vmatprep.subr.bf16.mxu0 %v4766_v11  ;;  %v328_v18 = vrot.slane %v327_v4, 4  ;;  %v347_v23 = vrot.slane %v345_v15, 4  ;;  %v350_v27 = vrot.slane %v348_v16, 5  ;;  %v354_v28 = vshll.u32 %v5025_v9, 16  ;;  %v4775_v16 = vld [vmem:[%s6019_s1 + $0x150] sm:$0xff]  }
  0x22   : > { %v358_v29 = vshrl.u32 %v5025_v9, 16  ;;  %v338_v32 = vrot.slane %v337_v19, 4  ;;  %v366_v47 = vrot.slane %v364_v33, 5  ;;  %v374_v54 = vrot.slane %v372_v44, 5  ;;  %v5106_v33 = vld [vmem:[%s4939_s14 + $0x50] sm:$0x1] }
  0x23   : > { %4053 = vmatpush3.bf16.msra.mxu1 %v4765_v10  ;;  %v309_v10 = vsel %vm4984_vm2, %v304_v63, %v308_v46  ;;  %v351_v38 = vor.u32 %v350_v27, %v347_v23  ;;  %v356_v39 = vrot.slane %v354_v28, 5  ;;  %v4773_v46 = vld [vmem:[%s6019_s1 + $0x148] sm:$0xff]   ;;  %v388_v57 = vshll.u32 %v5051_v35, 16 }
  0x24   : > { %4245 = vmatpush3.bf16.msra.mxu0 %v4766_v11  ;;  %4054 = vmatprep.subr.bf16.mxu1 %v4767_v17  ;;  %v319_v11 = vsel %vm4984_vm2, %v314_v0, %v318_v50  ;;  %v360_v40 = vrot.slane %v358_v29, 4  ;;  %v343_v45 = vsel %vm4984_vm2, %v338_v32, %v342_v20  ;;  %v378_v50 = vshll.u32 %v5042_v30, 16  ;;  %v5080_v0 = vld [vmem:[%s4939_s14 + $0x40] sm:$0xf]  ;;  %v5097_v27 = vld [vmem:[%s4939_s14 + $0x48] sm:$0xf] }
  0x25   : > { %4246 = vmatprep.subr.bf16.mxu0 %v4768_v31  ;;  %v352_v52 = vrot.slane %v351_v38, 4  ;;  %v5073_v60 = vcombine.low %v4990_v41, %v4993_v42  ;;  %v384_v4 = vrot.slane %v382_v56, 4  ;;  %v390_v5 = vrot.slane %v388_v57, 5  ;;  %v5100_v28 = vld [vmem:[%s4939_s14 + $0x4c] sm:$0xf] }
  0x26   : > { %v380_v55 = vrot.slane %v378_v50, 5  ;;  %v396_v6 = vshll.u32 %v5066_v58, 16  ;;  %v426_v44 = vshll.u32 %v5100_v28, 16  ;;  %v430_v50 = vshrl.u32 %v5100_v28, 16 }
  0x27   : > { %4055 = vmatpush3.bf16.msra.mxu1 %v4767_v17  ;;  %v3566_v17 = vcombine.low %v309_v10, %v319_v11  ;;  %v357_v61 = vsel %vm4984_vm2, %v352_v52, %v356_v39  ;;  %v402_v10 = vshll.u32 %v5080_v0, 16 }
  0x28   : > { %4247 = vmatpush3.bf16.msra.mxu0 %v4768_v31  ;;  %4056 = vmatprep.subr.bf16.mxu1 %v4769_v36  ;;  %v333_v31 = vsel %vm4984_vm2, %v328_v18, %v332_v2  ;;  %v393_v2 = vshrl.u32 %v5066_v58, 16  ;;  %v385_v19 = vor.u32 %v384_v4, %v380_v55  ;;  %v398_v20 = vrot.slane %v396_v6, 5  ;;  %v5137_v6 = vld [vmem:[%s4939_s14 + $0x58] sm:$0xf] }
  0x29   : > { %4248 = vmatprep.subr.bf16.mxu0 %v4770_v53  ;;  %4250 = vmatprep.mubr.bf16.mxu0 %v3566_v17  ;;  %v5061_v51 = vcombine.low %v333_v31, %v343_v45  ;;  %v404_v23 = vrot.slane %v402_v10, 5  ;;  %v4776_v45 = vld [vmem:[%s6019_s1 + $0x158] sm:$0xff]  }
  0x2a   : > { %v386_v38 = vrot.slane %v385_v19, 4  ;;  %v5140_v10 = vld [vmem:[%s4939_s14 + $0x5c] sm:$0x1] }
  0x2b   : > { %4057 = vmatpush3.bf16.msra.mxu1 %v4769_v36  ;;  %v369_v36 = vshrl.u32 %v5037_v22, 16 }
  0x2c   : > { %4249 = vmatpush3.bf16.msra.mxu0 %v4770_v53  ;;  %4090 = vmatprep.subr.bf16.mxu1 %v4771_v1  ;;  %v361_v53 = vor.u32 %v360_v40, %v356_v39  ;;  %v420_v40 = vshll.u32 %v5097_v27, 16  ;;  %v391_v52 = vsel %vm4984_vm2, %v386_v38, %v390_v5  ;;  %v5134_v5 = vld [vmem:[%s4939_s14 + $0x54] sm:$0xf] }
  0x2d   : > { %4282 = vmatprep.subr.bf16.mxu0 %v4772_v8  ;;  %v371_v49 = vrot.slane %v369_v36, 4  ;;  %v4780_v36 = vld [vmem:[%s6019_s1 + $0x18] sm:$0xff]   ;;  %v441_v19 = vshrl.u32 %v5134_v5, 16 }
  0x2e   : > { %4059 = vmatmul.mubr.bf16.vlgmr.msra.gmra.mrb[0].mxu1 %v3566_v17  ;;  %v362_v62 = vrot.slane %v361_v53, 4  ;;  %v406_v17 = vshrl.u32 %v5080_v0, 16 }
  0x2f   : > { %4091 = vmatpush3.bf16.msra.mxu1 %v4771_v1  ;;  %4251 = vmatmul.mubr.bf16.vlgmr.msra.gmra.mrb[0].mxu0 %v5061_v51  ;;  %v375_v63 = vor.u32 %v374_v54, %v371_v49  ;;  %v5083_v1 = vld [vmem:[%s4939_s14 + $0x44] sm:$0x1]  ;;  %v422_v54 = vrot.slane %v420_v40, 5  ;;  %v454_v40 = vshrl.u32 %v5137_v6, 16 }
  0x30   : > { %4092 = vmatprep.subr.bf16.mxu1 %v4774_v34  ;;  %4062 = vmatprep.mubr.bf16.mxu1 %v5061_v51  ;;  %v367_v11 = vsel %vm4984_vm2, %v362_v62, %v366_v47  ;;  %v408_v31 = vrot.slane %v406_v17, 4  ;;  %v412_v32 = vshll.u32 %v5083_v1, 16  ;;  %v436_v62 = vshll.u32 %v5106_v33, 16 }
  0x31   : > { %4283 = vmatpush3.bf16.msra.mxu0 %v4772_v8  ;;  %v376_v15 = vrot.slane %v375_v63, 4  ;;  %v395_v8 = vrot.slane %v393_v2, 4  ;;  %v5094_v18 = vcombine.low %v357_v61, %v367_v11  ;;  %v432_v61 = vrot.slane %v430_v50, 4  ;;  %v4778_v63 = vld [vmem:[%s6019_s1 + $0x160] sm:$0xff]   ;;  %v5174_v50 = vld [vmem:[%s4939_s14 + $0x68] sm:$0x1] }
  0x32   : > { %4284 = vmatprep.subr.bf16.mxu0 %v4773_v46  ;;  %v409_v47 = vor.u32 %v408_v31, %v404_v23  ;;  %v414_v49 = vrot.slane %v412_v32, 5  ;;  %v4783_v2 = vld [vmem:[%s6019_s1 + $0x20] sm:$0xff]   ;;  %v5144_v11 = vcombine.low %v5017_v3, %v5025_v9  ;;  %v438_v17 = vrot.slane %v436_v62, 5 }
  0x33   : > { %4093 = vmatpush3.bf16.msra.mxu1 %v4774_v34  ;;  %6041 = vst [vmem:[#allocation2_spill] sm:$0xff] %v5094_v18  ;;  %v381_v29 = vsel %vm4984_vm2, %v376_v15, %v380_v55  ;;  %v417_v34 = vshrl.u32 %v5097_v27, 16  ;;  %4254 = vmatprep.mubr.bf16.mxu0 %v5094_v18  ;;  %v399_v39 = vor.u32 %v398_v20, %v395_v8  ;;  %v428_v55 = vrot.slane %v426_v44, 5  ;;  %v5160_v32 = vld [vmem:[%s4939_s14 + $0x60] sm:$0xf] }
  0x34   : > { %4094 = vmatprep.subr.bf16.mxu1 %v4777_v59  ;;  %v5122_v56 = vcombine.low %v381_v29, %v391_v52  ;;  %v410_v57 = vrot.slane %v409_v47, 4  ;;  %v5148_v15 = vcombine.low %v5037_v22, %v5042_v30  ;;  %v444_v29 = vshll.u32 %v5134_v5, 16  ;;  %v5168_v47 = vld [vmem:[%s4939_s14 + $0x64] sm:$0xf] }
  0x35   : > { %4285 = vmatpush3.bf16.msra.mxu0 %v4773_v46  ;;  %v419_v46 = vrot.slane %v417_v34, 4  ;;  %v400_v53 = vrot.slane %v399_v39, 4  ;;  %v433_v8 = vor.u32 %v432_v61, %v428_v55  ;;  %v450_v31 = vshll.u32 %v5137_v6, 16  ;;  %v4785_v34 = vld [vmem:[%s6019_s1 + $0x28] sm:$0xff]  }
  0x36   : > { %4063 = vmatmul.mubr.bf16.gmra.mrb[4].mxu1 %v5094_v18  ;;  %4286 = vmatprep.subr.bf16.mxu0 %v4775_v16  ;;  %6042 = vst [vmem:[#allocation3_spill] sm:$0xff] %v5122_v56  ;;  %v443_v39 = vrot.slane %v441_v19, 4  ;;  %v460_v44 = vshll.u32 %v5140_v10, 16  ;;  %v465_v52 = vshrl.u32 %v5160_v32, 16  ;;  %v484_v19 = vshll.u32 %v5174_v50, 16 }
  0x37   : > { %4095 = vmatpush3.bf16.msra.mxu1 %v4777_v59  ;;  %v405_v4 = vsel %vm4984_vm2, %v400_v53, %v404_v23  ;;  %v423_v59 = vor.u32 %v422_v54, %v419_v46  ;;  %4255 = vmatmul.mubr.bf16.gmra.mrb[4].mxu0 %v5122_v56  ;;  %v434_v38 = vrot.slane %v433_v8, 4  ;;  %v452_v46 = vrot.slane %v450_v31, 5 }
  0x38   : > { %4096 = vmatprep.subr.bf16.mxu1 %v4780_v36  ;;  %4066 = vmatprep.mubr.bf16.mxu1 %v5122_v56  ;;  %v456_v54 = vrot.slane %v454_v40, 4  ;;  %v5202_v40 = vld [vmem:[%s4939_s14 + $0x6c] sm:$0xf] }
  0x39   : > { %4287 = vmatpush3.bf16.msra.mxu0 %v4775_v16  ;;  %v415_v16 = vsel %vm4984_vm2, %v410_v57, %v414_v49  ;;  %v424_v23 = vrot.slane %v423_v59, 4  ;;  %v439_v53 = vsel %vm4984_vm2, %v434_v38, %v438_v17  ;;  %v462_v57 = vrot.slane %v460_v44, 5 }
  0x3a   : > { %4288 = vmatprep.subr.bf16.mxu0 %v4776_v45  ;;  %v5155_v20 = vcombine.low %v405_v4, %v415_v16  ;;  %v467_v4 = vrot.slane %v465_v52, 4  ;;  %v474_v59 = vshll.u32 %v5168_v47, 16  ;;  %v457_v16 = vor.u32 %v456_v54, %v452_v46 }
  0x3b   : > { %4097 = vmatpush3.bf16.msra.mxu1 %v4780_v36  ;;  %v429_v49 = vsel %vm4984_vm2, %v424_v23, %v428_v55  ;;  %v446_v36 = vrot.slane %v444_v29, 5  ;;  %v468_v55 = vshll.u32 %v5160_v32, 16  ;;  %v478_v17 = vshrl.u32 %v5168_v47, 16  ;;  %v4787_v29 = vld [vmem:[%s6019_s1 + $0x30] sm:$0xff]  }
  0x3c   : > { %6043 = vst [vmem:[#allocation4_spill] sm:$0xff] %v5155_v20  ;;  %4098 = vmatprep.subr.bf16.mxu1 %v4783_v2  ;;  %4258 = vmatprep.mubr.bf16.mxu0 %v5155_v20  ;;  %v5184_v61 = vcombine.low %v429_v49, %v439_v53  ;;  %v476_v31 = vrot.slane %v474_v59, 5  ;;  %v3614_v38 = vrot.slane %v4962_v21, 9  ;;  %v458_v44 = vrot.slane %v457_v16, 4  ;;  %v5209_v53 = vld [vmem:[%s4939_s14 + $0x70] sm:$0xf] }
  0x3d   : > { %4289 = vmatpush3.bf16.msra.mxu0 %v4776_v45  ;;  %v4779_v45 = vld [vmem:[%s6019_s1 + $0x168] sm:$0xff]   ;;  %v447_v62 = vor.u32 %v446_v36, %v443_v39  ;;  %v470_v8 = vrot.slane %v468_v55, 5  ;;  %v1279_v39 = vrot.slane %v4965_v24, 5  ;;  %v480_v36 = vrot.slane %v478_v17, 4 }
  0x3e   : > { %4067 = vmatmul.mubr.bf16.gmra.mrb[8].mxu1 %v5155_v20  ;;  %4290 = vmatprep.subr.bf16.mxu0 %v4778_v63  ;;  %6044 = vst [vmem:[#allocation5_spill] sm:$0xff] %v5184_v61  ;;  %v486_v52 = vrot.slane %v484_v19, 5  ;;  %v1282_v55 = vrot.slane %v4968_v25, 5  ;;  %v463_v59 = vsel %vm4984_vm2, %v458_v44, %v462_v57  ;;  %v498_v19 = vshll.u32 %v5209_v53, 16 }
  0x3f   : > { %4099 = vmatpush3.bf16.msra.mxu1 %v4783_v2  ;;  %4070 = vmatprep.mubr.bf16.mxu1 %v5184_v61  ;;  %v448_v2 = vrot.slane %v447_v62, 4  ;;  %v471_v49 = vor.u32 %v470_v8, %v467_v4  ;;  %v1280_v24 = vsel %vm5191_vm5, %v3614_v38, %v1279_v39  ;;  %v1281_v54 = vrot.slane %v1279_v39, 4  ;;  %v5217_v62 = vld [vmem:[%s4939_s14 + $0x74] sm:$0x1]  ;;  %v4789_v4 = vld [vmem:[%s6019_s1 + $0x38] sm:$0xff]  }
  0x40   : > { %4100 = vmatprep.subr.bf16.mxu1 %v4785_v34  ;;  %4259 = vmatmul.mubr.bf16.gmra.mrb[8].mxu0 %v5184_v61  ;;  %v481_v8 = vor.u32 %v480_v36, %v476_v31  ;;  %v500_v36 = vrot.slane %v498_v19, 5  ;;  %v1300_v20 = vrot.slane %v5042_v30, 5 }
  0x41   : > { %4291 = vmatpush3.bf16.msra.mxu0 %v4778_v63  ;;  %v4781_v63 = vld [vmem:[%s6019_s1 + $0x170] sm:$0xff]   ;;  %v453_v21 = vsel %vm4984_vm2, %v448_v2, %v452_v46  ;;  %v472_v16 = vrot.slane %v471_v49, 4  ;;  %v489_v46 = vshrl.u32 %v5202_v40, 16  ;;  %v1283_v25 = vsel %vm5191_vm5, %v1281_v54, %v1282_v55  ;;  %v5232_v2 = vld [vmem:[%s4939_s14 + $0x78] sm:$0xf] }
  0x42   : > { %4292 = vmatprep.subr.bf16.mxu0 %v4779_v45  ;;  %v5225_v17 = vcombine.low %v453_v21, %v463_v59  ;;  %v482_v38 = vrot.slane %v481_v8, 4  ;;  %v5239_v39 = vcombine.low %v1280_v24, %v1283_v25  ;;  %v502_v21 = vshrl.u32 %v5209_v53, 16  ;;  %v5246_v54 = vld [vmem:[%s4939_s14 + $0x7c] sm:$0xf] }
  0x43   : > { %4101 = vmatpush3.bf16.msra.mxu1 %v4785_v34  ;;  %v492_v34 = vshll.u32 %v5202_v40, 16  ;;  %v477_v57 = vsel %vm4984_vm2, %v472_v16, %v476_v31  ;;  %v491_v44 = vrot.slane %v489_v46, 4  ;;  %v508_v31 = vshll.u32 %v5217_v62, 16  ;;  %v5253_v16 = vld [vmem:[%s4939_s14 + $0x80] sm:$0x1] }
  0x44   : > { %4102 = vmatprep.subr.bf16.mxu1 %v4787_v29  ;;  %6047 = vst [vmem:[#allocation6_spill] sm:$0xff] %v5225_v17  ;;  %4262 = vmatprep.mubr.bf16.mxu0 %v5225_v17  ;;  %v487_v55 = vsel %vm4984_vm2, %v482_v38, %v486_v52  ;;  %v3615_v59 = vrot.slane %v4990_v41, 9  ;;  %v1286_v24 = vrot.slane %v4993_v42, 5  ;;  %v513_v8 = vshrl.u32 %v5232_v2, 16  ;;  %v5261_v52 = vld [vmem:[%s6019_s1 + $0x80] sm:$0xff]  }
  0x45   : > { %4293 = vmatpush3.bf16.msra.mxu0 %v4779_v45  ;;  %v4782_v45 = vld [vmem:[%s6019_s1 + $0x178] sm:$0xff]   ;;  %v494_v49 = vrot.slane %v492_v34, 5  ;;  %v5256_v46 = vcombine.low %v477_v57, %v487_v55  ;;  %v504_v34 = vrot.slane %v502_v21, 4  ;;  %v510_v19 = vrot.slane %v508_v31, 5  ;;  %v5270_v38 = vld [vmem:[%s4939_s14 + $0x84] sm:$0xf] }
  0x46   : > { %4294 = vmatprep.subr.bf16.mxu0 %v4781_v63  ;;  %4071 = vmatmul.mubr.bf16.gmra.mrb[12].mxu1 %v5225_v17  ;;  %v1287_v41 = vsel %vm5191_vm5, %v3615_v59, %v1286_v24  ;;  %v1288_v42 = vrot.slane %v1286_v24, 4  ;;  %v515_v57 = vrot.slane %v513_v8, 4  ;;  %v522_v21 = vshll.u32 %v5246_v54, 16 }
  0x47   : > { %4103 = vmatpush3.bf16.msra.mxu1 %v4787_v29  ;;  %6048 = vst [vmem:[#allocation7_spill] sm:$0xff] %v5256_v46  ;;  %v495_v25 = vor.u32 %v494_v49, %v491_v44  ;;  %v4784_v29 = vld [vmem:[%s6019_s1 + $0x180] sm:$0xff]   ;;  %4074 = vmatprep.mubr.bf16.mxu1 %v5256_v46  ;;  %v505_v49 = vor.u32 %v504_v34, %v500_v36  ;;  %v526_v31 = vshrl.u32 %v5246_v54, 16  ;;  %v532_v24 = vshll.u32 %v5253_v16, 16 }
  0x48   : > { %4104 = vmatprep.subr.bf16.mxu1 %v4789_v4  ;;  %4263 = vmatmul.mubr.bf16.gmra.mrb[12].mxu0 %v5256_v46  ;;  %v1290_v55 = vsel %vm5191_vm5, %v1288_v42, %v1289_v7  ;;  %v3616_v8 = vrot.slane %v5017_v3, 9  ;;  %v524_v46 = vrot.slane %v522_v21, 5  ;;  %v5290_v3 = vld [vmem:[%s4939_s14 + $0x88] sm:$0xf] }
  0x49   : > { %4295 = vmatpush3.bf16.msra.mxu0 %v4781_v63  ;;  %v516_v63 = vshll.u32 %v5232_v2, 16  ;;  %v496_v44 = vrot.slane %v495_v25, 4  ;;  %4298 = vmatprep.mubr.bf16.mxu0 %v5239_v39  ;;  %v506_v34 = vrot.slane %v505_v49, 4  ;;  %v5285_v26 = vcombine.low %v1287_v41, %v1290_v55 }
  0x4a   : > { %4296 = vmatprep.subr.bf16.mxu0 %v4782_v45  ;;  %v528_v7 = vrot.slane %v526_v31, 4  ;;  %v534_v42 = vrot.slane %v532_v24, 5  ;;  %v537_v41 = vshrl.u32 %v5270_v38, 16  ;;  %v4786_v31 = vld [vmem:[%s6019_s1 + $0x188] sm:$0xff]   ;;  %v5309_v24 = vld [vmem:[%s4939_s14 + $0x90] sm:$0xf] }
  0x4b   : > { %v518_v59 = vrot.slane %v516_v63, 5  ;;  %4105 = vmatpush3.bf16.msra.mxu1 %v4789_v4  ;;  %v501_v25 = vsel %vm4984_vm2, %v496_v44, %v500_v36  ;;  %v1293_v63 = vrot.slane %v5025_v9, 5  ;;  %v511_v4 = vsel %vm4984_vm2, %v506_v34, %v510_v19  ;;  %v5296_v36 = vld [vmem:[%s4939_s14 + $0x8c] sm:$0x1]  ;;  %v5312_v34 = vld [vmem:[%s4939_s14 + $0x94] sm:$0xf] }
  0x4c   : > { %4138 = vmatprep.subr.bf16.mxu1 %v5261_v52  ;;  %v540_v44 = vshll.u32 %v5270_v38, 16  ;;  %v529_v21 = vor.u32 %v528_v7, %v524_v46  ;;  %v539_v55 = vrot.slane %v537_v41, 4  ;;  %v556_v7 = vshll.u32 %v5296_v36, 16 }
  0x4d   : > { %4297 = vmatpush3.bf16.msra.mxu0 %v4782_v45  ;;  %v519_v48 = vor.u32 %v518_v59, %v515_v57  ;;  %v1296_v45 = vrot.slane %v5032_v14, 5  ;;  %v5300_v57 = vcombine.low %v501_v25, %v511_v4  ;;  %v1294_v9 = vsel %vm5191_vm5, %v3616_v8, %v1293_v63 }
  0x4e   : > { %4330 = vmatprep.subr.bf16.mxu0 %v4784_v29  ;;  %v1295_v19 = vrot.slane %v1293_v63, 4  ;;  %v542_v14 = vrot.slane %v540_v44, 5  ;;  %v546_v59 = vshll.u32 %v5290_v3, 16  ;;  %v550_v8 = vshrl.u32 %v5290_v3, 16 }
  0x4f   : > { %6049 = vst [vmem:[#allocation8_spill] sm:$0xff] %v5300_v57  ;;  %v520_v49 = vrot.slane %v519_v48, 4  ;;  %4075 = vmatmul.mubr.bf16.gmra.mrb[16].mxu1 %v5300_v57  ;;  %v530_v48 = vrot.slane %v529_v21, 4  ;;  %v3617_v44 = vrot.slane %v5037_v22, 9  ;;  %v558_v21 = vrot.slane %v556_v7, 5  ;;  %v4788_v22 = vld [vmem:[%s6019_s1 + $0x190] sm:$0xff]  }
  0x50   : > { %4299 = vmatmul.mubr.bf16.vlgmr.msra.gmra.mrb[0].mxu0 %v5285_v26  ;;  %v1297_v63 = vsel %vm5191_vm5, %v1295_v19, %v1296_v45  ;;  %v543_v4 = vor.u32 %v542_v14, %v539_v55  ;;  %v548_v41 = vrot.slane %v546_v59, 5  ;;  %v1303_v45 = vrot.slane %v5051_v35, 5  ;;  %v5348_v59 = vld [vmem:[%s4939_s14 + $0x9c] sm:$0xf] }
  0x51   : > { %v525_v25 = vsel %vm4984_vm2, %v520_v49, %v524_v46  ;;  %4331 = vmatpush3.bf16.msra.mxu0 %v4784_v29  ;;  %v535_v57 = vsel %vm4984_vm2, %v530_v48, %v534_v42  ;;  %v5325_v46 = vcombine.low %v1294_v9, %v1297_v63  ;;  %v552_v49 = vrot.slane %v550_v8, 4  ;;  %v5336_v42 = vld [vmem:[%s4939_s14 + $0x98] sm:$0x1]  ;;  %v5351_v63 = vld [vmem:[%s4939_s14 + $0xa0] sm:$0xf] }
  0x52   : > { %v5327_v17 = vcombine.low %v525_v25, %v535_v57  ;;  %v544_v61 = vrot.slane %v543_v4, 4  ;;  %4332 = vmatprep.subr.bf16.mxu0 %v4786_v31  ;;  %v561_v57 = vshrl.u32 %v5309_v24, 16  ;;  %v564_v9 = vshll.u32 %v5309_v24, 16 }
  0x53   : > { %4302 = vmatprep.mubr.bf16.mxu0 %v5325_v46  ;;  %v553_v29 = vor.u32 %v552_v49, %v548_v41  ;;  %v570_v19 = vshll.u32 %v5312_v34, 16  ;;  %v1301_v35 = vsel %vm5191_vm5, %v3617_v44, %v1300_v20  ;;  %v1302_v55 = vrot.slane %v1300_v20, 4  ;;  %v5358_v20 = vld [vmem:[%s4939_s14 + $0xa4] sm:$0x1] }
  0x54   : > { %6050 = vst [vmem:[#allocation9_spill] sm:$0xff] %v5327_v17  ;;  %4078 = vmatprep.mubr.bf16.mxu1 %v5327_v17  ;;  %v549_v30 = vsel %vm4984_vm2, %v544_v61, %v548_v41  ;;  %v574_v14 = vshrl.u32 %v5312_v34, 16  ;;  %v563_v48 = vrot.slane %v561_v57, 4  ;;  %v566_v8 = vrot.slane %v564_v9, 5 }
  0x55   : > { %v554_v25 = vrot.slane %v553_v29, 4  ;;  %4333 = vmatpush3.bf16.msra.mxu0 %v4786_v31  ;;  %v572_v7 = vrot.slane %v570_v19, 5  ;;  %v1304_v4 = vsel %vm5191_vm5, %v1302_v55, %v1303_v45  ;;  %v580_v61 = vshll.u32 %v5336_v42, 16  ;;  %v4790_v45 = vld [vmem:[%s6019_s1 + $0x198] sm:$0xff]  }
  0x56   : > { %v576_v49 = vrot.slane %v574_v14, 4  ;;  %v3618_v41 = vrot.slane %v5066_v58, 9  ;;  %4334 = vmatprep.subr.bf16.mxu0 %v4788_v22  ;;  %v5362_v44 = vcombine.low %v1301_v35, %v1304_v4  ;;  %v567_v29 = vor.u32 %v566_v8, %v563_v48 }
  0x57   : > { %v559_v31 = vsel %vm4984_vm2, %v554_v25, %v558_v21  ;;  %v1307_v57 = vrot.slane %v5080_v0, 5  ;;  %v582_v58 = vrot.slane %v580_v61, 5  ;;  %v1310_v55 = vrot.slane %v5083_v1, 5  ;;  %v5376_v25 = vld [vmem:[%s4939_s14 + $0xa8] sm:$0xf] }
  0x58   : > { %v5368_v9 = vcombine.low %v549_v30, %v559_v31  ;;  %v577_v19 = vor.u32 %v576_v49, %v572_v7  ;;  %4303 = vmatmul.mubr.bf16.gmra.mrb[4].mxu0 %v5362_v44  ;;  %v568_v14 = vrot.slane %v567_v29, 4  ;;  %v585_v0 = vshrl.u32 %v5348_v59, 16  ;;  %v4794_v30 = vld [vmem:[%s6019_s1 + $0x1a0] sm:$0xff]   ;;  %v5386_v49 = vld [vmem:[%s4939_s14 + $0xac] sm:$0xf] }
  0x59   : > { %v1308_v21 = vsel %vm5191_vm5, %v3618_v41, %v1307_v57  ;;  %v1309_v35 = vrot.slane %v1307_v57, 4  ;;  %v588_v1 = vshll.u32 %v5348_v59, 16  ;;  %v594_v8 = vshll.u32 %v5351_v63, 16  ;;  %4335 = vmatpush3.bf16.msra.mxu0 %v4788_v22 }
  0x5a   : > { %6051 = vst [vmem:[#allocation10_spill] sm:$0xff] %v5368_v9  ;;  %4079 = vmatmul.mubr.bf16.gmra.mrb[20].mxu1 %v5368_v9  ;;  %v578_v48 = vrot.slane %v577_v19, 4  ;;  %v598_v4 = vshrl.u32 %v5351_v63, 16  ;;  %v573_v61 = vsel %vm4984_vm2, %v568_v14, %v572_v7  ;;  %v587_v31 = vrot.slane %v585_v0, 4  ;;  %4336 = vmatprep.subr.bf16.mxu0 %v4790_v45  ;;  %v5401_v14 = vld [vmem:[%s4939_s14 + $0xb0] sm:$0x1] }
  0x5b   : > { %v1311_v41 = vsel %vm5191_vm5, %v1309_v35, %v1310_v55  ;;  %v604_v29 = vshll.u32 %v5358_v20, 16  ;;  %v590_v9 = vrot.slane %v588_v1, 5  ;;  %v596_v17 = vrot.slane %v594_v8, 5 }
  0x5c   : > { %v583_v57 = vsel %vm4984_vm2, %v578_v48, %v582_v58  ;;  %v5395_v19 = vcombine.low %v1308_v21, %v1311_v41  ;;  %v600_v56 = vrot.slane %v598_v4, 4  ;;  %v3619_v7 = vrot.slane %v5097_v27, 9 }
  0x5d   : > { %v5397_v22 = vcombine.low %v573_v61, %v583_v57  ;;  %v606_v18 = vrot.slane %v604_v29, 5  ;;  %v591_v55 = vor.u32 %v590_v9, %v587_v31  ;;  %v1314_v35 = vrot.slane %v5100_v28, 5  ;;  %4337 = vmatpush3.bf16.msra.mxu0 %v4790_v45  ;;  %v4798_v28 = vld [vmem:[%s6019_s1 + $0x1a8] sm:$0xff]  }
  0x5e   : > { %4306 = vmatprep.mubr.bf16.mxu0 %v5395_v19  ;;  %v1317_v0 = vrot.slane %v5106_v33, 5  ;;  %v609_v58 = vshrl.u32 %v5376_v25, 16  ;;  %v601_v21 = vor.u32 %v600_v56, %v596_v17  ;;  %v612_v48 = vshll.u32 %v5376_v25, 16  ;;  %4338 = vmatprep.subr.bf16.mxu0 %v4794_v30 }
  0x5f   : > { %6052 = vst [vmem:[#allocation11_spill] sm:$0xff] %v5397_v22  ;;  %4082 = vmatprep.mubr.bf16.mxu1 %v5397_v22  ;;  %v618_v1 = vshll.u32 %v5386_v49, 16  ;;  %v622_v27 = vshrl.u32 %v5386_v49, 16  ;;  %v592_v9 = vrot.slane %v591_v55, 4  ;;  %v1315_v33 = vsel %vm5191_vm5, %v3619_v7, %v1314_v35  ;;  %v5423_v22 = vld [vmem:[%s4939_s14 + $0xb4] sm:$0xf] }
  0x60   : > { %v1316_v45 = vrot.slane %v1314_v35, 4  ;;  %v611_v8 = vrot.slane %v609_v58, 4  ;;  %v602_v56 = vrot.slane %v601_v21, 4  ;;  %v614_v4 = vrot.slane %v612_v48, 5  ;;  %v5430_v48 = vld [vmem:[%s4939_s14 + $0xb8] sm:$0xf] }
  0x61   : > { %v620_v61 = vrot.slane %v618_v1, 5  ;;  %v624_v41 = vrot.slane %v622_v27, 4  ;;  %v597_v31 = vsel %vm4984_vm2, %v592_v9, %v596_v17  ;;  %v628_v57 = vshll.u32 %v5401_v14, 16  ;;  %4339 = vmatpush3.bf16.msra.mxu0 %v4794_v30  ;;  %v4802_v17 = vld [vmem:[%s6019_s1 + $0x1b0] sm:$0xff]   ;;  %v5440_v27 = vld [vmem:[%s4939_s14 + $0xbc] sm:$0x1] }
  0x62   : > { %v1318_v29 = vsel %vm5191_vm5, %v1316_v45, %v1317_v0  ;;  %v3620_v55 = vrot.slane %v5134_v5, 9  ;;  %v607_v7 = vsel %vm4984_vm2, %v602_v56, %v606_v18  ;;  %v615_v58 = vor.u32 %v614_v4, %v611_v8  ;;  %4340 = vmatprep.subr.bf16.mxu0 %v4798_v28  ;;  %v4806_v4 = vld [vmem:[%s6019_s1 + $0x1b8] sm:$0xff]  }
  0x63   : > { %v5427_v35 = vcombine.low %v1315_v33, %v1318_v29  ;;  %v625_v21 = vor.u32 %v624_v41, %v620_v61  ;;  %v5435_v0 = vcombine.low %v597_v31, %v607_v7  ;;  %v630_v5 = vrot.slane %v628_v57, 5 }
  0x64   : > { %v1321_v1 = vrot.slane %v5137_v6, 5  ;;  %v1324_v30 = vrot.slane %v5140_v10, 5  ;;  %v616_v18 = vrot.slane %v615_v58, 4  ;;  %v633_v33 = vshrl.u32 %v5423_v22, 16 }
  0x65   : > { %6053 = vst [vmem:[#allocation12_spill] sm:$0xff] %v5435_v0  ;;  %4307 = vmatmul.mubr.bf16.gmra.mrb[8].mxu0 %v5427_v35  ;;  %v626_v9 = vrot.slane %v625_v21, 4  ;;  %v636_v45 = vshll.u32 %v5423_v22, 16  ;;  %4083 = vmatmul.mubr.bf16.gmra.mrb[24].mxu1 %v5435_v0  ;;  %v642_v6 = vshll.u32 %v5430_v48, 16  ;;  %v646_v10 = vshrl.u32 %v5430_v48, 16 }
  0x66   : > { %v1322_v8 = vsel %vm5191_vm5, %v3620_v55, %v1321_v1  ;;  %v1323_v56 = vrot.slane %v1321_v1, 4  ;;  %4341 = vmatpush3.bf16.msra.mxu0 %v4798_v28  ;;  %v621_v41 = vsel %vm4984_vm2, %v616_v18, %v620_v61  ;;  %v635_v29 = vrot.slane %v633_v33, 4 }
  0x67   : > { %v631_v31 = vsel %vm4984_vm2, %v626_v9, %v630_v5  ;;  %v638_v57 = vrot.slane %v636_v45, 5  ;;  %4342 = vmatprep.subr.bf16.mxu0 %v4802_v17  ;;  %v644_v58 = vrot.slane %v642_v6, 5  ;;  %v648_v28 = vrot.slane %v646_v10, 4 }
  0x68   : > { %v5457_v55 = vcombine.low %v621_v41, %v631_v31  ;;  %v1325_v7 = vsel %vm5191_vm5, %v1323_v56, %v1324_v30  ;;  %v652_v0 = vshll.u32 %v5440_v27, 16  ;;  %v3621_v61 = vrot.slane %v5160_v32, 9  ;;  %v5472_v30 = vld [vmem:[%s6019_s1 + $0x1c0] sm:$0xff]  }
  0x69   : > { %v5461_v21 = vcombine.low %v1322_v8, %v1325_v7  ;;  %v639_v1 = vor.u32 %v638_v57, %v635_v29  ;;  %v649_v5 = vor.u32 %v648_v28, %v644_v58  ;;  %v1328_v18 = vrot.slane %v5168_v47, 5 }
  0x6a   : > { %4086 = vmatprep.mubr.bf16.mxu1 %v5457_v55  ;;  %v1331_v9 = vrot.slane %v5174_v50, 5  ;;  %v3622_v33 = vrot.slane %v5202_v40, 9  ;;  %4343 = vmatpush3.bf16.msra.mxu0 %v4802_v17  ;;  %v654_v8 = vrot.slane %v652_v0, 5  ;;  %v1335_v56 = vrot.slane %v5209_v53, 5 }
  0x6b   : > { %4310 = vmatprep.mubr.bf16.mxu0 %v5461_v21  ;;  %v640_v45 = vrot.slane %v639_v1, 4  ;;  %v1338_v6 = vrot.slane %v5217_v62, 5  ;;  %4344 = vmatprep.subr.bf16.mxu0 %v4806_v4  ;;  %v650_v10 = vrot.slane %v649_v5, 4  ;;  %v1329_v50 = vsel %vm5191_vm5, %v3621_v61, %v1328_v18 }
  0x6c   : > { %v1330_v41 = vrot.slane %v1328_v18, 4  ;;  %v3623_v17 = vrot.slane %v5232_v2, 9  ;;  %v1336_v29 = vsel %vm5191_vm5, %v3622_v33, %v1335_v56  ;;  %v1337_v57 = vrot.slane %v1335_v56, 4 }
  0x6d   : > { %v645_v31 = vsel %vm4984_vm2, %v640_v45, %v644_v58  ;;  %v1342_v0 = vrot.slane %v5246_v54, 5  ;;  %v655_v62 = vsel %vm4984_vm2, %v650_v10, %v654_v8  ;;  %v1345_v28 = vrot.slane %v5253_v16, 5 }
  0x6e   : > { %v1332_v7 = vsel %vm5191_vm5, %v1330_v41, %v1331_v9  ;;  %v3624_v1 = vrot.slane %v5270_v38, 9  ;;  %4345 = vmatpush3.bf16.msra.mxu0 %v4806_v4  ;;  %v5491_v61 = vcombine.low %v645_v31, %v655_v62  ;;  %v1339_v5 = vsel %vm5191_vm5, %v1337_v57, %v1338_v6  ;;  %v4797_v57 = vld [vmem:[%s6019_s1 + $0x88] sm:$0xff]  }
  0x6f   : > { %v5493_v58 = vcombine.low %v1329_v50, %v1332_v7  ;;  %4378 = vmatprep.subr.bf16.mxu0 %v5472_v30  ;;  %v5498_v18 = vcombine.low %v1336_v29, %v1339_v5  ;;  %v1344_v33 = vrot.slane %v1342_v0, 4  ;;  %v1349_v45 = vrot.slane %v5290_v3, 5 }
  0x70   : > { %v1352_v9 = vrot.slane %v5296_v36, 5  ;;  %4087 = vmatmul.mubr.bf16.gmra.mrb[28].mxu1 %v5491_v61  ;;  %v6054_v16 = vcombine.low %v4948_v12, %v4951_v13  ;;  %v1343_v4 = vsel %vm5191_vm5, %v3623_v17, %v1342_v0  ;;  %v1356_v6 = vrot.slane %v5312_v34, 5 }
  0x71   : > { %4311 = vmatmul.mubr.bf16.gmra.mrb[12].mxu0 %v5493_v58  ;;  %v1346_v8 = vsel %vm5191_vm5, %v1344_v33, %v1345_v28  ;;  %v1351_v56 = vrot.slane %v1349_v45, 4  ;;  %v1363_v36 = vrot.slane %v5351_v63, 5  ;;  %v1350_v10 = vsel %vm5191_vm5, %v3624_v1, %v1349_v45 }
  0x72   : > { %4106 = vmatprep.mubr.bf16.mxu1 %v6054_v16  ;;  %4314 = vmatprep.mubr.bf16.mxu0 %v5498_v18  ;;  %v5518_v13 = vcombine.low %v1343_v4, %v1346_v8  ;;  %v3625_v50 = vrot.slane %v5309_v24, 9  ;;  %v1359_v41 = vrot.slane %v5336_v42, 5  ;;  %v1358_v17 = vrot.slane %v1356_v6, 4 }
  0x73   : > { %v1353_v12 = vsel %vm5191_vm5, %v1351_v56, %v1352_v9  ;;  %v3626_v31 = vrot.slane %v5348_v59, 9  ;;  %v1365_v0 = vrot.slane %v1363_v36, 4  ;;  %v1366_v62 = vrot.slane %v5358_v20, 5 }
  0x74   : > { %v5523_v29 = vcombine.low %v1350_v10, %v1353_v12  ;;  %v1357_v7 = vsel %vm5191_vm5, %v3625_v50, %v1356_v6  ;;  %v1370_v42 = vrot.slane %v5386_v49, 5  ;;  %v5536_v28 = vcombine.low %v5160_v32, %v5168_v47  ;;  %v4801_v47 = vld [vmem:[%s6019_s1 + $0x90] sm:$0xff]   ;;  %v249_v6 = vld [vmem:[%s4939_s14 + $0xc8] sm:$0x1]  ;;  %v4846_v10 = vld [vmem:[%s4939_s14 + $0x40] sm:$0xf] }
  0x75   : > { %v1360_v20 = vsel %vm5191_vm5, %v1358_v17, %v1359_v41  ;;  %v1364_v1 = vsel %vm5191_vm5, %v3626_v31, %v1363_v36  ;;  %v3627_v5 = vrot.slane %v5376_v25, 9  ;;  %v5547_v33 = vcombine.low %v5202_v40, %v5209_v53  ;;  %v4845_v36 = vld [vmem:[%s4939_s14 + $0x3c] sm:$0xf]  ;;  %v4847_v41 = vld [vmem:[%s4939_s14 + $0x48] sm:$0xf] }
  0x76   : > { %v1367_v32 = vsel %vm5191_vm5, %v1365_v0, %v1366_v62  ;;  %v5558_v45 = vcombine.low %v5232_v2, %v5246_v54  ;;  %v5562_v40 = vcombine.low %v5270_v38, %v5290_v3  ;;  %v5566_v53 = vcombine.low %v5309_v24, %v5312_v34  ;;  %v5586_v24 = vld [vmem:[%s4939_s14 + $0xc4] sm:$0xf]  ;;  %v4848_v17 = vld [vmem:[%s4939_s14 + $0x4c] sm:$0xf] }
  0x77   : > { %v5570_v9 = vcombine.low %v5348_v59, %v5351_v63  ;;  %v5574_v16 = vcombine.low %v5376_v25, %v5386_v49  ;;  %v5576_v4 = vcombine.low %v1357_v7, %v1360_v20  ;;  %v1372_v2 = vrot.slane %v1370_v42, 4  ;;  %v4805_v25 = vld [vmem:[%s6019_s1 + $0x98] sm:$0xff]  }
  0x78   : > { %4107 = vmatmul.mubr.bf16.vlgmr.msra.gmra.mrb[0].mxu1 %v4997_v43  ;;  %v1373_v54 = vrot.slane %v5401_v14, 5  ;;  %v5581_v38 = vcombine.low %v5423_v22, %v5430_v48  ;;  %v5583_v3 = vcombine.low %v1364_v1, %v1367_v32  ;;  %v3628_v34 = vrot.slane %v5423_v22, 9  ;;  %v5600_v14 = vld [vmem:[%s4939_s14 + $0xc0] sm:$0xf] }
  0x79   : > { %4315 = vmatmul.mubr.bf16.gmra.mrb[16].mxu0 %v5518_v13  ;;  %4139 = vmatpush3.bf16.msra.mxu1 %v5261_v52  ;;  %v1377_v52 = vrot.slane %v5430_v48, 5  ;;  %v1380_v63 = vrot.slane %v5440_v27, 5  ;;  %v1371_v49 = vsel %vm5191_vm5, %v3627_v5, %v1370_v42  ;;  %v2257_v48 = vrot.slane %v5586_v24, 5  ;;  %v4809_v27 = vld [vmem:[%s6019_s1 + $0xa0] sm:$0xff]  }
  0x7a   : > { %4110 = vmatprep.mubr.bf16.mxu1 %v5073_v60  ;;  %4318 = vmatprep.mubr.bf16.mxu0 %v5523_v29  ;;  %v1374_v22 = vsel %vm5191_vm5, %v1372_v2, %v1373_v54  ;;  %v5615_v12 = vcombine.low %v4845_v36, %v4846_v10  ;;  %v5621_v31 = vcombine.low %v4847_v41, %v4848_v17  ;;  %v1972_v0 = vshll.u32 %v5600_v14, 16  ;;  %v4813_v54 = vld [vmem:[%s6019_s1 + $0xa8] sm:$0xff]   ;;  %v4817_v36 = vld [vmem:[%s6019_s1 + $0xb0] sm:$0xff]   ;;  %v4850_v10 = vld [vmem:[%s4939_s14 + $0x58] sm:$0xf] }
  0x7b   : > { %4140 = vmatprep.subr.bf16.mxu1 %v4797_v57  ;;  %v1379_v59 = vrot.slane %v1377_v52, 4  ;;  %v1378_v8 = vsel %vm5191_vm5, %v3628_v34, %v1377_v52  ;;  %v5617_v50 = vcombine.low %v1371_v49, %v1374_v22  ;;  %v1978_v62 = vshll.u32 %v5586_v24, 16 }
  0x7c   : > { %v1982_v7 = vshrl.u32 %v5586_v24, 16  ;;  %v3719_v20 = vrot.slane %v5600_v14, 9  ;;  %v2259_v1 = vrot.slane %v2257_v48, 4  ;;  %v2260_v5 = vrot.slane %v249_v6, 5 }
  0x7d   : > { %4141 = vmatpush3.bf16.msra.mxu1 %v4797_v57  ;;  %v1381_v56 = vsel %vm5191_vm5, %v1379_v59, %v1380_v63  ;;  %v1969_v57 = vshrl.u32 %v5600_v14, 16  ;;  %v1980_v52 = vrot.slane %v1978_v62, 5  ;;  %v1988_v63 = vshll.u32 %v249_v6, 16  ;;  %v4849_v6 = vld [vmem:[%s4939_s14 + $0x54] sm:$0xf]  ;;  %v4823_v62 = vld [vmem:[%s6019_s1 + $0xc0] sm:$0xff]  }
  0x7e   : > { %4142 = vmatprep.subr.bf16.mxu1 %v4801_v47  ;;  %v5627_v42 = vcombine.low %v1378_v8, %v1381_v56  ;;  %v1984_v2 = vrot.slane %v1982_v7, 4  ;;  %v2261_v49 = vsel %vm5191_vm5, %v2259_v1, %v2260_v5  ;;  %v5646_v41 = vcombine.low %v4849_v6, %v4850_v10  ;;  %v4814_v7 = vld [vmem:[%s6019_s1 + $0x1c8] sm:$0xff]   ;;  %v4822_v1 = vld [vmem:[%s6019_s1 + $0x1d8] sm:$0xff]   ;;  %v4827_v6 = vld [vmem:[%s6019_s1 + $0xd0] sm:$0xff]  }
  0x7f   : > { %v1971_v32 = vrot.slane %v1969_v57, 4  ;;  %v1990_v56 = vrot.slane %v1988_v63, 5  ;;  %v4830_v10 = vld [vmem:[%s6019_s1 + $0xd8] sm:$0xff]  }
  0x80   : > { %4111 = vmatmul.mubr.bf16.gmra.mrb[4].mxu1 %v5144_v11  ;;  %v1985_v59 = vor.u32 %v1984_v2, %v1980_v52  ;;  %v4853_v2 = vld [vmem:[%s4939_s14] sm:$0xf] }
  0x81   : > { %4319 = vmatmul.mubr.bf16.gmra.mrb[20].mxu0 %v5576_v4  ;;  %4114 = vmatprep.mubr.bf16.mxu1 %v5148_v15 }
  0x82   : > { %4322 = vmatprep.mubr.bf16.mxu0 %v5583_v3  ;;  %4143 = vmatpush3.bf16.msra.mxu1 %v4801_v47  ;;  %v1974_v47 = vrot.slane %v1972_v0, 5  ;;  %v1986_v8 = vrot.slane %v1985_v59, 4  ;;  %v4821_v0 = vld [vmem:[%s6019_s1 + $0xb8] sm:$0xff]   ;;  %v4826_v59 = vld [vmem:[%s6019_s1 + $0x1e8] sm:$0xff]  }
  0x83   : > { %4144 = vmatprep.subr.bf16.mxu1 %v4805_v25 }
  0x84   : > { %v1975_v34 = vor.u32 %v1974_v47, %v1971_v32  ;;  %v4824_v32 = vld [vmem:[%s6019_s1 + $0x1e0] sm:$0xff]   ;;  %v4852_v47 = vld [vmem:[%s4939_s14 + $0x8] sm:$0x1] }
  0x86   : > { %4145 = vmatpush3.bf16.msra.mxu1 %v4805_v25  ;;  %v2258_v25 = vsel %vm5191_vm5, %v3719_v20, %v2257_v48  ;;  %v1976_v22 = vrot.slane %v1975_v34, 4  ;;  %v4818_v20 = vld [vmem:[%s6019_s1 + $0x1d0] sm:$0xff]  }
  0x87   : > { %4146 = vmatprep.subr.bf16.mxu1 %v4809_v27  ;;  %v5648_v17 = vcombine.low %v2258_v25, %v2261_v49  ;;  %v4828_v49 = vld [vmem:[%s6019_s1 + $0x1f0] sm:$0xff]  }
  0x88   : > { %4115 = vmatmul.mubr.bf16.gmra.mrb[8].mxu1 %v5615_v12  ;;  %v1981_v48 = vsel %vm4984_vm2, %v1976_v22, %v1980_v52  ;;  %v1275_v52 = vrot.slane %v4852_v47, 5  ;;  %v6057_v47 = vld [vmem:[#allocation4_spill] sm:$0xff] }
  0x89   : > { %4323 = vmatmul.mubr.bf16.gmra.mrb[24].mxu0 %v5617_v50  ;;  %4118 = vmatprep.mubr.bf16.mxu1 %v5621_v31 }
  0x8a   : > { %4326 = vmatprep.mubr.bf16.mxu0 %v5627_v42  ;;  %4147 = vmatpush3.bf16.msra.mxu1 %v4809_v27  ;;  %v1991_v27 = vsel %vm4984_vm2, %v1986_v8, %v1990_v56  ;;  %v4832_v8 = vld [vmem:[%s6019_s1 + $0x1f8] sm:$0xff]   ;;  %v4834_v56 = vld [vmem:[%s6019_s1 + $0x200] sm:$0xff]  }
  0x8b   : > { %4148 = vmatprep.subr.bf16.mxu1 %v4813_v54  ;;  %v5654_v57 = vcombine.low %v1981_v48, %v1991_v27  ;;  %v5735_v48 = vcombine.low %v5600_v14, %v5586_v24  ;;  %v4835_v27 = vld [vmem:[%s6019_s1 + $0xe8] sm:$0xff]   ;;  %v4837_v24 = vld [vmem:[%s6019_s1 + $0xf0] sm:$0xff]  }
  0x8e   : > { %4149 = vmatpush3.bf16.msra.mxu1 %v4813_v54  ;;  %v3613_v54 = vrot.slane %v4853_v2, 9  ;;  %v4841_v2 = vld [vmem:[%s6019_s1 + $0x220] sm:$0xff]  }
  0x8f   : > { %4150 = vmatprep.subr.bf16.mxu1 %v4817_v36 }
  0x90   : > { %4119 = vmatmul.mubr.bf16.gmra.mrb[12].mxu1 %v5646_v41 }
  0x91   : > { %4327 = vmatmul.mubr.bf16.gmra.mrb[28].mxu0 %v5648_v17  ;;  %4122 = vmatprep.mubr.bf16.mxu1 %v5536_v28 }
  0x92   : > { %4346 = vmatprep.mubr.bf16.mxu0 %v5073_v60  ;;  %4151 = vmatpush3.bf16.msra.mxu1 %v4817_v36  ;;  %v4825_v36 = vld [vmem:[%s6019_s1 + $0xc8] sm:$0xff]  }
  0x93   : > { %4152 = vmatprep.subr.bf16.mxu1 %v4821_v0 }
  0x96   : > { %4153 = vmatpush3.bf16.msra.mxu1 %v4821_v0  ;;  %v5745_v0 = vld [vmem:[%s4939_s14 + $0xcc] sm:$0xf] }
  0x97   : > { %4186 = vmatprep.subr.bf16.mxu1 %v4823_v62 }
  0x98   : > { %4123 = vmatmul.mubr.bf16.gmra.mrb[16].mxu1 %v5547_v33 }
  0x99   : > { %4347 = vmatmul.mubr.bf16.vlgmr.msra.gmra.mrb[0].mxu0 %v5144_v11  ;;  %4126 = vmatprep.mubr.bf16.mxu1 %v5558_v45 }
  0x9a   : > { %4379 = vmatpush3.bf16.msra.mxu0 %v5472_v30  ;;  %4350 = vmatprep.mubr.bf16.mxu0 %v5148_v15  ;;  %v4851_v30 = vld [vmem:[%s4939_s14 + $0x4] sm:$0xf] }
  0x9b   : > { %4380 = vmatprep.subr.bf16.mxu0 %v4814_v7  ;;  %v1272_v5 = vrot.slane %v4851_v30, 5  ;;  %v6055_v30 = vld [vmem:[#allocation2_spill] sm:$0xff] }
  0x9d   : > { %v1274_v34 = vrot.slane %v1272_v5, 4  ;;  %v1273_v63 = vsel %vm5191_vm5, %v3613_v54, %v1272_v5  ;;  %v4838_v5 = vld [vmem:[%s6019_s1 + $0x210] sm:$0xff]   ;;  %v4842_v54 = vld [vmem:[%s6019_s1 + $0x228] sm:$0xff]  }
  0x9e   : > { %4381 = vmatpush3.bf16.msra.mxu0 %v4814_v7  ;;  %v4839_v7 = vld [vmem:[%s6019_s1 + $0xf8] sm:$0xff]  }
  0x9f   : > { %4382 = vmatprep.subr.bf16.mxu0 %v4818_v20  ;;  %v1276_v25 = vsel %vm5191_vm5, %v1274_v34, %v1275_v52  ;;  %v6058_v52 = vld [vmem:[#allocation5_spill] sm:$0xff]  ;;  %v6059_v34 = vld [vmem:[#allocation6_spill] sm:$0xff] }
  0xa0   : > { %4127 = vmatmul.mubr.bf16.gmra.mrb[20].mxu1 %v5562_v40  ;;  %v3645_v22 = vcombine.low %v1273_v63, %v1276_v25  ;;  %v4843_v63 = vld [vmem:[%s6019_s1 + $0x230] sm:$0xff]   ;;  %v4844_v25 = vld [vmem:[%s6019_s1 + $0x238] sm:$0xff]  }
  0xa1   : > { %4351 = vmatmul.mubr.bf16.gmra.mrb[4].mxu0 %v5615_v12  ;;  %4130 = vmatprep.mubr.bf16.mxu1 %v5566_v53 }
  0xa2   : > { %4354 = vmatprep.mubr.bf16.mxu0 %v5621_v31  ;;  %4383 = vmatpush3.bf16.msra.mxu0 %v4818_v20  ;;  %v4836_v20 = vld [vmem:[%s6019_s1 + $0x208] sm:$0xff]  }
  0xa3   : > { %4384 = vmatprep.subr.bf16.mxu0 %v4822_v1 }
  0xa6   : > { %4385 = vmatpush3.bf16.msra.mxu0 %v4822_v1  ;;  %v4854_v1 = vld [vmem:[%s6019_s1 + $0x100] sm:$0xff]  }
  0xa7   : > { %4386 = vmatprep.subr.bf16.mxu0 %v4824_v32 }
  0xa8   : > { %4131 = vmatmul.mubr.bf16.gmra.mrb[24].mxu1 %v5570_v9 }
  0xa9   : > { %4355 = vmatmul.mubr.bf16.gmra.mrb[8].mxu0 %v5646_v41  ;;  %4134 = vmatprep.mubr.bf16.mxu1 %v5574_v16 }
  0xaa   : > { %4358 = vmatprep.mubr.bf16.mxu0 %v5536_v28  ;;  %4387 = vmatpush3.bf16.msra.mxu0 %v4824_v32  ;;  %v4840_v32 = vld [vmem:[%s6019_s1 + $0x218] sm:$0xff]  }
  0xab   : > { %4388 = vmatprep.subr.bf16.mxu0 %v4826_v59 }
  0xae   : > { %4389 = vmatpush3.bf16.msra.mxu0 %v4826_v59  ;;  %v6060_v59 = vld [vmem:[#allocation7_spill] sm:$0xff] }
  0xaf   : > { %4390 = vmatprep.subr.bf16.mxu0 %v4828_v49 }
  0xb0   : > { %4135 = vmatmul.mubr.bf16.gmra.mrb[28].mxu1 %v5581_v38 }
  0xb1   : > { %4359 = vmatmul.mubr.bf16.gmra.mrb[12].mxu0 %v5547_v33  ;;  %4154 = vmatprep.mubr.bf16.mxu1 %v3645_v22  ;;  %v6062_v22 = vld [vmem:[#allocation9_spill] sm:$0xff] }
  0xb2   : > { %4362 = vmatprep.mubr.bf16.mxu0 %v5558_v45  ;;  %4391 = vmatpush3.bf16.msra.mxu0 %v4828_v49  ;;  %v6061_v49 = vld [vmem:[#allocation8_spill] sm:$0xff] }
  0xb3   : > { %4392 = vmatprep.subr.bf16.mxu0 %v4832_v8 }
  0xb6   : > { %4393 = vmatpush3.bf16.msra.mxu0 %v4832_v8  ;;  %v6063_v8 = vld [vmem:[#allocation10_spill] sm:$0xff] }
  0xb7   : > { %4426 = vmatprep.subr.bf16.mxu0 %v4834_v56 }
  0xb8   : > { %4155 = vmatmul.mubr.bf16.vlgmr.msra.gmra.mrb[0].mxu1 %v5239_v39  ;;  %v4833_v39 = vld [vmem:[%s6019_s1 + $0xe0] sm:$0xff]  }
  0xb9   : > { %4363 = vmatmul.mubr.bf16.gmra.mrb[16].mxu0 %v5562_v40  ;;  %4187 = vmatpush3.bf16.msra.mxu1 %v4823_v62  ;;  %v5748_v62 = vld [vmem:[%s4939_s14 + $0xd0] sm:$0xf] }
  0xba   : > { %4158 = vmatprep.mubr.bf16.mxu1 %v5285_v26  ;;  %4366 = vmatprep.mubr.bf16.mxu0 %v5566_v53  ;;  %v3761_v14 = vcombine.low %v5745_v0, %v5748_v62 }
  0xbb   : > { %4188 = vmatprep.subr.bf16.mxu1 %v4825_v36 }
  0xbd   : > { %4189 = vmatpush3.bf16.msra.mxu1 %v4825_v36  ;;  %v2792_v36 = vshll.u32 %v5745_v0, 16 }
  0xbe   : > { %4190 = vmatprep.subr.bf16.mxu1 %v4827_v6 }
  0xc0   : > { %4159 = vmatmul.mubr.bf16.gmra.mrb[4].mxu1 %v5325_v46 }
  0xc1   : > { %4367 = vmatmul.mubr.bf16.gmra.mrb[20].mxu0 %v5570_v9  ;;  %4162 = vmatprep.mubr.bf16.mxu1 %v5362_v44 }
  0xc2   : > { %4370 = vmatprep.mubr.bf16.mxu0 %v5574_v16  ;;  %4191 = vmatpush3.bf16.msra.mxu1 %v4827_v6  ;;  %v2802_v6 = vshrl.u32 %v5748_v62, 16 }
  0xc3   : > { %4192 = vmatprep.subr.bf16.mxu1 %v4830_v10 }
  0xc6   : > { %4193 = vmatpush3.bf16.msra.mxu1 %v4830_v10  ;;  %v6064_v10 = vld [vmem:[#allocation11_spill] sm:$0xff] }
  0xc7   : > { %4194 = vmatprep.subr.bf16.mxu1 %v4833_v39 }
  0xc8   : > { %4163 = vmatmul.mubr.bf16.gmra.mrb[8].mxu1 %v5395_v19 }
  0xc9   : > { %4371 = vmatmul.mubr.bf16.gmra.mrb[24].mxu0 %v5581_v38  ;;  %4166 = vmatprep.mubr.bf16.mxu1 %v5427_v35 }
  0xca   : > { %4374 = vmatprep.mubr.bf16.mxu0 %v5735_v48  ;;  %4195 = vmatpush3.bf16.msra.mxu1 %v4833_v39 }
  0xcb   : > { %4196 = vmatprep.subr.bf16.mxu1 %v4835_v27 }
  0xce   : > { %4197 = vmatpush3.bf16.msra.mxu1 %v4835_v27  ;;  %v2794_v27 = vrot.slane %v2792_v36, 5 }
  0xcf   : > { %4198 = vmatprep.subr.bf16.mxu1 %v4837_v24 }
  0xd0   : > { %4167 = vmatmul.mubr.bf16.gmra.mrb[12].mxu1 %v5461_v21 }
  0xd1   : > { %4375 = vmatmul.mubr.bf16.gmra.mrb[28].mxu0 %v3761_v14  ;;  %4170 = vmatprep.mubr.bf16.mxu1 %v5493_v58  ;;  %v2804_v14 = vrot.slane %v2802_v6, 4 }
  0xd2   : > { %4394 = vmatprep.mubr.bf16.mxu0 %v5061_v51  ;;  %4199 = vmatpush3.bf16.msra.mxu1 %v4837_v24  ;;  %v6056_v51 = vld [vmem:[#allocation3_spill] sm:$0xff] }
  0xd3   : > { %4200 = vmatprep.subr.bf16.mxu1 %v4839_v7 }
  0xd6   : > { %4201 = vmatpush3.bf16.msra.mxu1 %v4839_v7  ;;  %v4856_v7 = vld [vmem:[%s6019_s1 + $0x110] sm:$0xff]  }
  0xd7   : > { %4474 = vmatprep.subr.bf16.mxu1 %v4854_v1 }
  0xd8   : > { %4171 = vmatmul.mubr.bf16.gmra.mrb[16].mxu1 %v5498_v18 }
  0xd9   : > { %4395 = vmatmul.mubr.bf16.vlgmr.msra.gmra.mrb[0].mxu0 %v6055_v30  ;;  %4174 = vmatprep.mubr.bf16.mxu1 %v5518_v13 }
  0xda   : > { %4427 = vmatpush3.bf16.msra.mxu0 %v4834_v56  ;;  %4398 = vmatprep.mubr.bf16.mxu0 %v6056_v51  ;;  %v2789_v56 = vshrl.u32 %v5745_v0, 16 }
  0xdb   : > { %4428 = vmatprep.subr.bf16.mxu0 %v4836_v20 }
  0xdc   : > { %v2791_v39 = vrot.slane %v2789_v56, 4 }
  0xde   : > { %4429 = vmatpush3.bf16.msra.mxu0 %v4836_v20  ;;  %v6065_v20 = vld [vmem:[#allocation12_spill] sm:$0xff] }
  0xdf   : > { %4430 = vmatprep.subr.bf16.mxu0 %v4838_v5 }
  0xe0   : > { %4175 = vmatmul.mubr.bf16.gmra.mrb[20].mxu1 %v5523_v29 }
  0xe1   : > { %4399 = vmatmul.mubr.bf16.gmra.mrb[4].mxu0 %v6057_v47  ;;  %4178 = vmatprep.mubr.bf16.mxu1 %v5576_v4 }
  0xe2   : > { %4402 = vmatprep.mubr.bf16.mxu0 %v6058_v52  ;;  %4431 = vmatpush3.bf16.msra.mxu0 %v4838_v5  ;;  %v4857_v5 = vld [vmem:[%s6019_s1 + $0x118] sm:$0xff]  }
  0xe3   : > { %4432 = vmatprep.subr.bf16.mxu0 %v4840_v32 }
  0xe6   : > { %4433 = vmatpush3.bf16.msra.mxu0 %v4840_v32 }
  0xe7   : > { %4434 = vmatprep.subr.bf16.mxu0 %v4841_v2 }
  0xe8   : > { %4179 = vmatmul.mubr.bf16.gmra.mrb[24].mxu1 %v5583_v3 }
  0xe9   : > { %4403 = vmatmul.mubr.bf16.gmra.mrb[8].mxu0 %v6059_v34  ;;  %4182 = vmatprep.mubr.bf16.mxu1 %v5617_v50 }
  0xea   : > { %4406 = vmatprep.mubr.bf16.mxu0 %v6060_v59  ;;  %4435 = vmatpush3.bf16.msra.mxu0 %v4841_v2 }
  0xeb   : > { %4436 = vmatprep.subr.bf16.mxu0 %v4842_v54 }
  0xee   : > { %4437 = vmatpush3.bf16.msra.mxu0 %v4842_v54  ;;  %v4859_v54 = vld [vmem:[%s6019_s1 + $0x128] sm:$0xff]  }
  0xef   : > { %4438 = vmatprep.subr.bf16.mxu0 %v4843_v63 }
  0xf0   : > { %4183 = vmatmul.mubr.bf16.gmra.mrb[28].mxu1 %v5627_v42 }
  0xf1   : > { %4407 = vmatmul.mubr.bf16.gmra.mrb[12].mxu0 %v6061_v49  ;;  %4202 = vmatprep.mubr.bf16.mxu1 %v4997_v43  ;;  %v2798_v43 = vshll.u32 %v5748_v62, 16 }
  0xf2   : > { %4410 = vmatprep.mubr.bf16.mxu0 %v6062_v22  ;;  %4439 = vmatpush3.bf16.msra.mxu0 %v4843_v63 }
  0xf3   : > { %4440 = vmatprep.subr.bf16.mxu0 %v4844_v25  ;;  %v2800_v24 = vrot.slane %v2798_v43, 5 }
  0xf5   : > { %v2805_v30 = vor.u32 %v2804_v14, %v2800_v24 }
  0xf6   : > { %4441 = vmatpush3.bf16.msra.mxu0 %v4844_v25 }
  0xf7   : > { %v2806_v47 = vrot.slane %v2805_v30, 4 }
  0xf8   : > { %4203 = vmatmul.mubr.bf16.vlgmr.msra.gmra.mrb[0].mxu1 %v5073_v60  ;;  %v4855_v60 = vld [vmem:[%s6019_s1 + $0x108] sm:$0xff]  }
  0xf9   : > { %4411 = vmatmul.mubr.bf16.gmra.mrb[16].mxu0 %v6063_v8  ;;  %4482 = vmatpush3.bf16.msra.mxu1 %v4854_v1  ;;  %v2795_v1 = vor.u32 %v2794_v27, %v2791_v39 }
  0xfa   : > { %4206 = vmatprep.mubr.bf16.mxu1 %v5144_v11  ;;  %4414 = vmatprep.mubr.bf16.mxu0 %v6064_v10  ;;  %v5816_v11 = vld [vmem:[%s4939_s14 + $0xd4] sm:$0x1] }
  0xfb   : > { %4475 = vmatprep.subr.bf16.mxu1 %v4855_v60  ;;  %v2808_v51 = vshll.u32 %v5816_v11, 16  ;;  %v2796_v32 = vrot.slane %v2795_v1, 4 }
  0xfd   : > { %4483 = vmatpush3.bf16.msra.mxu1 %v4855_v60  ;;  %v2810_v52 = vrot.slane %v2808_v51, 5 }
  0xfe   : > { %4476 = vmatprep.subr.bf16.mxu1 %v4856_v7 }
  0xff   : > { %v2811_v2 = vsel %vm4984_vm2, %v2806_v47, %v2810_v52 }
 0x100   : > { %4207 = vmatmul.mubr.bf16.gmra.mrb[4].mxu1 %v5148_v15  ;;  %v4858_v15 = vld [vmem:[%s6019_s1 + $0x120] sm:$0xff]  }
 0x101   : > { %4415 = vmatmul.mubr.bf16.gmra.mrb[20].mxu0 %v6065_v20  ;;  %4210 = vmatprep.mubr.bf16.mxu1 %v5615_v12  ;;  %v2801_v12 = vsel %vm4984_vm2, %v2796_v32, %v2800_v24 }
 0x102   : > { %4418 = vmatprep.mubr.bf16.mxu0 %v5457_v55  ;;  %4484 = vmatpush3.bf16.msra.mxu1 %v4856_v7  ;;  %v3786_v34 = vcombine.low %v2801_v12, %v2811_v2 }
 0x103   : > { %4477 = vmatprep.subr.bf16.mxu1 %v4857_v5 }
 0x106   : > { %4485 = vmatpush3.bf16.msra.mxu1 %v4857_v5 }
 0x107   : > { %4478 = vmatprep.subr.bf16.mxu1 %v4858_v15 }
 0x108   : > { %4211 = vmatmul.mubr.bf16.gmra.mrb[8].mxu1 %v5621_v31  ;;  %v4860_v31 = vld [vmem:[%s6019_s1 + $0x130] sm:$0xff]  }
 0x109   : > { %4419 = vmatmul.mubr.bf16.gmra.mrb[24].mxu0 %v5491_v61  ;;  %4214 = vmatprep.mubr.bf16.mxu1 %v5646_v41 }
 0x10a   : > { %4422 = vmatprep.mubr.bf16.mxu0 %v5654_v57  ;;  %4486 = vmatpush3.bf16.msra.mxu1 %v4858_v15 }
 0x10b   : > { %4479 = vmatprep.subr.bf16.mxu1 %v4859_v54 }
 0x10e   : > { %4487 = vmatpush3.bf16.msra.mxu1 %v4859_v54 }
 0x10f   : > { %4480 = vmatprep.subr.bf16.mxu1 %v4860_v31 }
 0x110   : > { %4215 = vmatmul.mubr.bf16.gmra.mrb[12].mxu1 %v5536_v28 }
 0x111   : > { %4423 = vmatmul.mubr.bf16.gmra.mrb[28].mxu0 %v3786_v34  ;;  %4218 = vmatprep.mubr.bf16.mxu1 %v5547_v33 }
 0x112   : > { %4442 = vmatprep.mubr.bf16.mxu0 %v5285_v26  ;;  %4488 = vmatpush3.bf16.msra.mxu1 %v4860_v31  ;;  %v3077_v26 = vrot.slane %v5748_v62, 5 }
 0x113   : > { %4481 = vmatprep.subr.bf16.mxu1 %v4861_v37 }
 0x116   : > { %4489 = vmatpush3.bf16.msra.mxu1 %v4861_v37 }
 0x118   : > { %4219 = vmatmul.mubr.bf16.gmra.mrb[16].mxu1 %v5558_v45 }
 0x119   : > { %4443 = vmatmul.mubr.bf16.vlgmr.msra.gmra.mrb[0].mxu0 %v5325_v46  ;;  %4222 = vmatprep.mubr.bf16.mxu1 %v5562_v40  ;;  %v3795_v46 = vrot.slane %v5745_v0, 9 }
 0x11a   : > { %4446 = vmatprep.mubr.bf16.mxu0 %v5362_v44  ;;  %v3079_v44 = vrot.slane %v3077_v26, 4 }
 0x120   : > { %4223 = vmatmul.mubr.bf16.gmra.mrb[20].mxu1 %v5566_v53 }
 0x121   : > { %4447 = vmatmul.mubr.bf16.gmra.mrb[4].mxu0 %v5395_v19  ;;  %4226 = vmatprep.mubr.bf16.mxu1 %v5570_v9  ;;  %v3080_v19 = vrot.slane %v5816_v11, 5 }
 0x122   : > { %4450 = vmatprep.mubr.bf16.mxu0 %v5427_v35  ;;  %v3078_v35 = vsel %vm5191_vm5, %v3795_v46, %v3077_v26 }
 0x128   : > { %4227 = vmatmul.mubr.bf16.gmra.mrb[24].mxu1 %v5574_v16 }
 0x129   : > { %4451 = vmatmul.mubr.bf16.gmra.mrb[8].mxu0 %v5461_v21  ;;  %4230 = vmatprep.mubr.bf16.mxu1 %v5581_v38  ;;  %v3081_v21 = vsel %vm5191_vm5, %v3079_v44, %v3080_v19 }
 0x12a   : > { %4454 = vmatprep.mubr.bf16.mxu0 %v5493_v58  ;;  %v3812_v58 = vcombine.low %v3078_v35, %v3081_v21 }
 0x130   : > { %4231 = vmatmul.mubr.bf16.gmra.mrb[28].mxu1 %v5735_v48 }
 0x131   : > { %4455 = vmatmul.mubr.bf16.gmra.mrb[12].mxu0 %v5498_v18  ;;  %4266 = vmatprep.mubr.bf16.mxu1 %v6061_v49 }
 0x132   : > { %4458 = vmatprep.mubr.bf16.mxu0 %v5518_v13 }
 0x138   : > { %4267 = vmatmul.mubr.bf16.vlgmr.msra.gmra.mrb[16].mxu1 %v6062_v22 }
 0x139   : > { %4459 = vmatmul.mubr.bf16.gmra.mrb[16].mxu0 %v5523_v29  ;;  %4270 = vmatprep.mubr.bf16.mxu1 %v6063_v8 }
 0x13a   : > { %4462 = vmatprep.mubr.bf16.mxu0 %v5576_v4 }
 0x140   : > { %4271 = vmatmul.mubr.bf16.gmra.mrb[20].mxu1 %v6064_v10 }
 0x141   : > { %4463 = vmatmul.mubr.bf16.gmra.mrb[20].mxu0 %v5583_v3  ;;  %4274 = vmatprep.mubr.bf16.mxu1 %v6065_v20 }
 0x142   : > { %4466 = vmatprep.mubr.bf16.mxu0 %v5617_v50 }
 0x148   : > { %4275 = vmatmul.mubr.bf16.gmra.mrb[24].mxu1 %v5457_v55 }
 0x149   : > { %4467 = vmatmul.mubr.bf16.gmra.mrb[24].mxu0 %v5627_v42  ;;  %4278 = vmatprep.mubr.bf16.mxu1 %v5491_v61  ;;  %v5900_v42 = vld [vmem:[%s6020_s2] ss:$0 sm:$0xff] }
 0x14a   : > { %4470 = vmatprep.mubr.bf16.mxu0 %v5648_v17 }
 0x150   : > { %4279 = vmatmul.mubr.bf16.gmra.mrb[28].mxu1 %v5654_v57  ;;  %v5905_v57 = vld [vmem:[%s6021_s3] ss:$0 sm:$0xff] }
 0x151   : > { %4471 = vmatmul.mubr.bf16.gmra.mrb[28].mxu0 %v3812_v58 }
 0x1cb   : > { %v4204_v18 = vpop.f32.mrb[0].mxu1 }
 0x1cc   : > { %v1809_v13 = vpop.f32.mrb[1].mxu1 }
 0x1cd   : > { %v4205_v29 = vpop.f32.mrb[2].mxu1 }
 0x1ce   : > { %v1812_v55 = vpop.f32.mrb[3].mxu1 }
 0x1d3   : > { %v4208_v28 = vpop.f32.mrb[4].mxu1 }
 0x1d4   : > { %v1825_v33 = vpop.f32.mrb[5].mxu1 }
 0x1d5   : > { %v4209_v45 = vpop.f32.mrb[6].mxu1 }
 0x1d6   : > { %v1828_v61 = vpop.f32.mrb[7].mxu1 }
 0x1db   : > { %v4212_v40 = vpop.f32.mrb[8].mxu1 }
 0x1dc   : > { %v1841_v53 = vpop.f32.mrb[9].mxu1 }
 0x1dd   : > { %v5885_v9 = vpop.f32.mrb[10].mxu1 }
 0x1de   : > { %v5887_v16 = vpop.f32.mrb[11].mxu1 }
 0x1e3   : > { %v5889_v23 = vpop.f32.mrb[12].mxu1 }
 0x1e4   : > { %v5891_v4 = vpop.f32.mrb[13].mxu1 }
 0x1e5   : > { %v5893_v38 = vpop.f32.mrb[14].mxu1 }
 0x1e6   : > { %v5895_v3 = vpop.f32.mrb[15].mxu1 }
 0x1ec   : > { %v4444_v50 = vpop.f32.mrb[0].mxu0 }
 0x1ed   : > { %v4490_v41 = vadd.f32 %v4444_v50, %v4204_v18  ;;  %v3185_v17 = vpop.f32.mrb[1].mxu0 }
 0x1ee   : > { %v4491_v48 = vadd.f32 %v3185_v17, %v1809_v13  ;;  %v4445_v0 = vpop.f32.mrb[2].mxu0 }
 0x1ef   : > { %v3353_v62 = vmul.f32 %v4490_v41, %v5900_v42  ;;  %v4492_v59 = vadd.f32 %v4445_v0, %v4205_v29  ;;  %v3188_v63 = vpop.f32.mrb[3].mxu0 }
 0x1f0   : > { %v3351_v25 = vmul.f32 %v4491_v48, %v5900_v42  ;;  %v4493_v49 = vadd.f32 %v3188_v63, %v1812_v55 }
 0x1f1   : > { %v3392_v22 = vadd.f32 %v5905_v57, %v3353_v62  ;;  %v3354_v8 = vmul.f32 %v4492_v59, %v5900_v42 }
 0x1f2   : > { %v3390_v56 = vadd.f32 %v5905_v57, %v3351_v25  ;;  %v3352_v36 = vmul.f32 %v4493_v49, %v5900_v42 }
 0x1f3   : > { %v3424_v6 = vmax.f32 %v3392_v22, 0.0  ;;  %v3393_v43 = vadd.f32 %v5905_v57, %v3354_v8 }
 0x1f4   : > { %v3422_v10 = vmax.f32 %v3390_v56, 0.0  ;;  %v3391_v60 = vadd.f32 %v5905_v57, %v3352_v36  ;;  %v4448_v39 = vpop.f32.mrb[4].mxu0 }
 0x1f5   : > { %3456 = vst [vmem:[%s5915_s25 + $0x10] sm:$0xff] %v3424_v6  ;;  %v3425_v27 = vmax.f32 %v3393_v43, 0.0  ;;  %v4494_v24 = vadd.f32 %v4448_v39, %v4208_v28  ;;  %v3201_v14 = vpop.f32.mrb[5].mxu0 }
 0x1f6   : > { %3454 = vst [vmem:[%s5915_s25] sm:$0xff] %v3422_v10  ;;  %v3423_v7 = vmax.f32 %v3391_v60, 0.0  ;;  %v4495_v11 = vadd.f32 %v3201_v14, %v1825_v33  ;;  %v4449_v20 = vpop.f32.mrb[6].mxu0 }
 0x1f7   : > { %3457 = vst [vmem:[%s5915_s25 + $0x18] sm:$0xff] %v3425_v27  ;;  %v3357_v1 = vmul.f32 %v4494_v24, %v5900_v42  ;;  %v4496_v30 = vadd.f32 %v4449_v20, %v4209_v45  ;;  %v3204_v51 = vpop.f32.mrb[7].mxu0 }
 0x1f8   : > { %3455 = vst [vmem:[%s5915_s25 + $0x8] sm:$0xff] %v3423_v7  ;;  %v3355_v5 = vmul.f32 %v4495_v11, %v5900_v42  ;;  %v4497_v32 = vadd.f32 %v3204_v51, %v1828_v61 }
 0x1f9   : > { %v3396_v47 = vadd.f32 %v5905_v57, %v3357_v1  ;;  %v3358_v52 = vmul.f32 %v4496_v30, %v5900_v42 }
 0x1fa   : > { %v3394_v15 = vadd.f32 %v5905_v57, %v3355_v5  ;;  %v3356_v12 = vmul.f32 %v4497_v32, %v5900_v42 }
 0x1fb   : > { %v3428_v2 = vmax.f32 %v3396_v47, 0.0  ;;  %v3397_v54 = vadd.f32 %v5905_v57, %v3358_v52 }
 0x1fc   : > { %v3426_v34 = vmax.f32 %v3394_v15, 0.0  ;;  %v3395_v31 = vadd.f32 %v5905_v57, %v3356_v12  ;;  %v4452_v37 = vpop.f32.mrb[8].mxu0 }
 0x1fd   : > { %3460 = vst [vmem:[%s5915_s25 + $0x30] sm:$0xff] %v3428_v2  ;;  %v3429_v26 = vmax.f32 %v3397_v54, 0.0  ;;  %v4498_v46 = vadd.f32 %v4452_v37, %v4212_v40  ;;  %v3217_v44 = vpop.f32.mrb[9].mxu0 }
 0x1fe   : > { %3458 = vst [vmem:[%s5915_s25 + $0x20] sm:$0xff] %v3426_v34  ;;  %v3427_v19 = vmax.f32 %v3395_v31, 0.0  ;;  %v4499_v35 = vadd.f32 %v3217_v44, %v1841_v53  ;;  %v4453_v21 = vpop.f32.mrb[10].mxu0 }
 0x1ff   : > { %3461 = vst [vmem:[%s5915_s25 + $0x38] sm:$0xff] %v3429_v26  ;;  %v3361_v58 = vmul.f32 %v4498_v46, %v5900_v42  ;;  %v4500_v18 = vadd.f32 %v4453_v21, %v5885_v9  ;;  %v3220_v13 = vpop.f32.mrb[11].mxu0 }
 0x200   : > { %3459 = vst [vmem:[%s5915_s25 + $0x28] sm:$0xff] %v3427_v19  ;;  %v3359_v29 = vmul.f32 %v4499_v35, %v5900_v42  ;;  %v4501_v55 = vadd.f32 %v3220_v13, %v5887_v16 }
 0x201   : > { %v3400_v28 = vadd.f32 %v5905_v57, %v3361_v58  ;;  %v3362_v33 = vmul.f32 %v4500_v18, %v5900_v42 }
 0x202   : > { %v3398_v45 = vadd.f32 %v5905_v57, %v3359_v29  ;;  %v3360_v61 = vmul.f32 %v4501_v55, %v5900_v42 }
 0x203   : > { %v3432_v40 = vmax.f32 %v3400_v28, 0.0  ;;  %v3401_v53 = vadd.f32 %v5905_v57, %v3362_v33 }
 0x204   : > { %v3430_v9 = vmax.f32 %v3398_v45, 0.0  ;;  %v3399_v50 = vadd.f32 %v5905_v57, %v3360_v61  ;;  %v4456_v41 = vpop.f32.mrb[12].mxu0 }
 0x205   : > { %3464 = vst [vmem:[%s5915_s25 + $0x50] sm:$0xff] %v3432_v40  ;;  %v3433_v17 = vmax.f32 %v3401_v53, 0.0  ;;  %v4502_v16 = vadd.f32 %v4456_v41, %v5889_v23  ;;  %v3233_v48 = vpop.f32.mrb[13].mxu0 }
 0x206   : > { %3462 = vst [vmem:[%s5915_s25 + $0x40] sm:$0xff] %v3430_v9  ;;  %v3431_v0 = vmax.f32 %v3399_v50, 0.0  ;;  %v4503_v62 = vadd.f32 %v3233_v48, %v5891_v4  ;;  %v4457_v59 = vpop.f32.mrb[14].mxu0 }
 0x207   : > { %3465 = vst [vmem:[%s5915_s25 + $0x58] sm:$0xff] %v3433_v17  ;;  %v3365_v63 = vmul.f32 %v4502_v16, %v5900_v42  ;;  %v4504_v25 = vadd.f32 %v4457_v59, %v5893_v38  ;;  %v3236_v49 = vpop.f32.mrb[15].mxu0 }
 0x208   : > { %3463 = vst [vmem:[%s5915_s25 + $0x48] sm:$0xff] %v3431_v0  ;;  %v3363_v22 = vmul.f32 %v4503_v62, %v5900_v42  ;;  %v4505_v8 = vadd.f32 %v3236_v49, %v5895_v3 }
 0x209   : > { %v3404_v23 = vadd.f32 %v5905_v57, %v3365_v63  ;;  %v3366_v56 = vmul.f32 %v4504_v25, %v5900_v42 }
 0x20a   : > { %v3402_v4 = vadd.f32 %v5905_v57, %v3363_v22  ;;  %v3364_v36 = vmul.f32 %v4505_v8, %v5900_v42 }
 0x20b   : > { %v3436_v6 = vmax.f32 %v3404_v23, 0.0  ;;  %v3405_v43 = vadd.f32 %v5905_v57, %v3366_v56  ;;  %v4268_v60 = vpop.f32.mrb[16].mxu1 }
 0x20c   : > { %v3434_v38 = vmax.f32 %v3402_v4, 0.0  ;;  %v3403_v10 = vadd.f32 %v5905_v57, %v3364_v36  ;;  %v4460_v39 = vpop.f32.mrb[16].mxu0  ;;  %v2159_v24 = vpop.f32.mrb[17].mxu1 }
 0x20d   : > { %3468 = vst [vmem:[%s5915_s25 + $0x70] sm:$0xff] %v3436_v6  ;;  %v3437_v3 = vmax.f32 %v3405_v43, 0.0  ;;  %v4506_v27 = vadd.f32 %v4460_v39, %v4268_v60  ;;  %v3249_v14 = vpop.f32.mrb[17].mxu0  ;;  %v4269_v20 = vpop.f32.mrb[18].mxu1 }
 0x20e   : > { %3466 = vst [vmem:[%s5915_s25 + $0x60] sm:$0xff] %v3434_v38  ;;  %v3435_v7 = vmax.f32 %v3403_v10, 0.0  ;;  %v4507_v11 = vadd.f32 %v3249_v14, %v2159_v24  ;;  %v4461_v1 = vpop.f32.mrb[18].mxu0  ;;  %v2162_v5 = vpop.f32.mrb[19].mxu1 }
 0x20f   : > { %3469 = vst [vmem:[%s5915_s25 + $0x78] sm:$0xff] %v3437_v3  ;;  %v3369_v30 = vmul.f32 %v4506_v27, %v5900_v42  ;;  %v4508_v51 = vadd.f32 %v4461_v1, %v4269_v20  ;;  %v3252_v32 = vpop.f32.mrb[19].mxu0 }
 0x210   : > { %3467 = vst [vmem:[%s5915_s25 + $0x68] sm:$0xff] %v3435_v7  ;;  %v3367_v47 = vmul.f32 %v4507_v11, %v5900_v42  ;;  %v4509_v52 = vadd.f32 %v3252_v32, %v2162_v5 }
 0x211   : > { %v3408_v15 = vadd.f32 %v5905_v57, %v3369_v30  ;;  %v3370_v12 = vmul.f32 %v4508_v51, %v5900_v42 }
 0x212   : > { %v3406_v2 = vadd.f32 %v5905_v57, %v3367_v47  ;;  %v3368_v54 = vmul.f32 %v4509_v52, %v5900_v42 }
 0x213   : > { %v3440_v34 = vmax.f32 %v3408_v15, 0.0  ;;  %v3409_v31 = vadd.f32 %v5905_v57, %v3370_v12  ;;  %v4272_v46 = vpop.f32.mrb[20].mxu1 }
 0x214   : > { %v3438_v37 = vmax.f32 %v3406_v2, 0.0  ;;  %v3407_v26 = vadd.f32 %v5905_v57, %v3368_v54  ;;  %v4464_v44 = vpop.f32.mrb[20].mxu0  ;;  %v2175_v21 = vpop.f32.mrb[21].mxu1 }
 0x215   : > { %3472 = vst [vmem:[%s5915_s25 + $0x90] sm:$0xff] %v3440_v34  ;;  %v3441_v19 = vmax.f32 %v3409_v31, 0.0  ;;  %v4510_v35 = vadd.f32 %v4464_v44, %v4272_v46  ;;  %v3265_v58 = vpop.f32.mrb[21].mxu0  ;;  %v4273_v29 = vpop.f32.mrb[22].mxu1 }
 0x216   : > { %3470 = vst [vmem:[%s5915_s25 + $0x80] sm:$0xff] %v3438_v37  ;;  %v3439_v18 = vmax.f32 %v3407_v26, 0.0  ;;  %v4511_v13 = vadd.f32 %v3265_v58, %v2175_v21  ;;  %v4465_v55 = vpop.f32.mrb[22].mxu0  ;;  %v2178_v45 = vpop.f32.mrb[23].mxu1 }
 0x217   : > { %3473 = vst [vmem:[%s5915_s25 + $0x98] sm:$0xff] %v3441_v19  ;;  %v3373_v28 = vmul.f32 %v4510_v35, %v5900_v42  ;;  %v4512_v33 = vadd.f32 %v4465_v55, %v4273_v29  ;;  %v3268_v61 = vpop.f32.mrb[23].mxu0 }
 0x218   : > { %3471 = vst [vmem:[%s5915_s25 + $0x88] sm:$0xff] %v3439_v18  ;;  %v3371_v40 = vmul.f32 %v4511_v13, %v5900_v42  ;;  %v4513_v53 = vadd.f32 %v3268_v61, %v2178_v45 }
 0x219   : > { %v3412_v9 = vadd.f32 %v5905_v57, %v3373_v28  ;;  %v3374_v50 = vmul.f32 %v4512_v33, %v5900_v42 }
 0x21a   : > { %v3410_v41 = vadd.f32 %v5905_v57, %v3371_v40  ;;  %v3372_v17 = vmul.f32 %v4513_v53, %v5900_v42 }
 0x21b   : > { %v3444_v16 = vmax.f32 %v3412_v9, 0.0  ;;  %v3413_v48 = vadd.f32 %v5905_v57, %v3374_v50  ;;  %v4276_v59 = vpop.f32.mrb[24].mxu1 }
 0x21c   : > { %v3442_v0 = vmax.f32 %v3410_v41, 0.0  ;;  %v3411_v62 = vadd.f32 %v5905_v57, %v3372_v17  ;;  %v4468_v63 = vpop.f32.mrb[24].mxu0  ;;  %v2191_v22 = vpop.f32.mrb[25].mxu1 }
 0x21d   : > { %3476 = vst [vmem:[%s5915_s25 + $0xb0] sm:$0xff] %v3444_v16  ;;  %v3445_v25 = vmax.f32 %v3413_v48, 0.0  ;;  %v4514_v49 = vadd.f32 %v4468_v63, %v4276_v59  ;;  %v3281_v8 = vpop.f32.mrb[25].mxu0  ;;  %v4277_v4 = vpop.f32.mrb[26].mxu1 }
 0x21e   : > { %3474 = vst [vmem:[%s5915_s25 + $0xa0] sm:$0xff] %v3442_v0  ;;  %v3443_v23 = vmax.f32 %v3411_v62, 0.0  ;;  %v4515_v56 = vadd.f32 %v3281_v8, %v2191_v22  ;;  %v4469_v36 = vpop.f32.mrb[26].mxu0  ;;  %v2194_v38 = vpop.f32.mrb[27].mxu1 }
 0x21f   : > { %3477 = vst [vmem:[%s5915_s25 + $0xb8] sm:$0xff] %v3445_v25  ;;  %v3377_v6 = vmul.f32 %v4514_v49, %v5900_v42  ;;  %v4516_v43 = vadd.f32 %v4469_v36, %v4277_v4  ;;  %v3284_v10 = vpop.f32.mrb[27].mxu0 }
 0x220   : > { %3475 = vst [vmem:[%s5915_s25 + $0xa8] sm:$0xff] %v3443_v23  ;;  %v3375_v60 = vmul.f32 %v4515_v56, %v5900_v42  ;;  %v4517_v39 = vadd.f32 %v3284_v10, %v2194_v38 }
 0x221   : > { %v3416_v3 = vadd.f32 %v5905_v57, %v3377_v6  ;;  %v3378_v27 = vmul.f32 %v4516_v43, %v5900_v42 }
 0x222   : > { %v3414_v24 = vadd.f32 %v5905_v57, %v3375_v60  ;;  %v3376_v14 = vmul.f32 %v4517_v39, %v5900_v42 }
 0x223   : > { %v3448_v7 = vmax.f32 %v3416_v3, 0.0  ;;  %v3417_v11 = vadd.f32 %v5905_v57, %v3378_v27  ;;  %v4280_v30 = vpop.f32.mrb[28].mxu1 }
 0x224   : > { %v3446_v20 = vmax.f32 %v3414_v24, 0.0  ;;  %v3415_v1 = vadd.f32 %v5905_v57, %v3376_v14  ;;  %v4472_v51 = vpop.f32.mrb[28].mxu0  ;;  %v2207_v47 = vpop.f32.mrb[29].mxu1 }
 0x225   : > { %3480 = vst [vmem:[%s5915_s25 + $0xd0] sm:$0xff] %v3448_v7  ;;  %v3449_v5 = vmax.f32 %v3417_v11, 0.0  ;;  %v4518_v32 = vadd.f32 %v4472_v51, %v4280_v30  ;;  %v3297_v52 = vpop.f32.mrb[29].mxu0  ;;  %v4281_v2 = vpop.f32.mrb[30].mxu1 }
 0x226   : > { %3478 = vst [vmem:[%s5915_s25 + $0xc0] sm:$0xff] %v3446_v20  ;;  %v3447_v15 = vmax.f32 %v3415_v1, 0.0  ;;  %v4519_v12 = vadd.f32 %v3297_v52, %v2207_v47  ;;  %v4473_v54 = vpop.f32.mrb[30].mxu0  ;;  %v2210_v37 = vpop.f32.mrb[31].mxu1 }
 0x227   : > { %3481 = vst [vmem:[%s5915_s25 + $0xd8] sm:$0xff] %v3449_v5  ;;  %v3381_v34 = vmul.f32 %v4518_v32, %v5900_v42  ;;  %v4520_v31 = vadd.f32 %v4473_v54, %v4281_v2  ;;  %v3300_v26 = vpop.f32.mrb[31].mxu0 }
 0x228   : > { %3479 = vst [vmem:[%s5915_s25 + $0xc8] sm:$0xff] %v3447_v15  ;;  %v3379_v46 = vmul.f32 %v4519_v12, %v5900_v42  ;;  %v4521_v44 = vadd.f32 %v3300_v26, %v2210_v37 }
 0x229   : > { %v3420_v19 = vadd.f32 %v5905_v57, %v3381_v34  ;;  %v3382_v35 = vmul.f32 %v4520_v31, %v5900_v42 }
 0x22a   : > { %v3418_v21 = vadd.f32 %v5905_v57, %v3379_v46  ;;  %v3380_v58 = vmul.f32 %v4521_v44, %v5900_v42 }
 0x22b   : > { %v3452_v18 = vmax.f32 %v3420_v19, 0.0  ;;  %v3421_v13 = vadd.f32 %v5905_v57, %v3382_v35 }
 0x22c   : > { %v3450_v29 = vmax.f32 %v3418_v21, 0.0  ;;  %v3419_v55 = vadd.f32 %v5905_v57, %v3380_v58 }
 0x22d   : > { %3484 = vst [vmem:[%s5915_s25 + $0xf0] sm:$0xff] %v3452_v18  ;;  %v3453_v28 = vmax.f32 %v3421_v13, 0.0 }
 0x22e   : > { %3482 = vst [vmem:[%s5915_s25 + $0xe0] sm:$0xff] %v3450_v29  ;;  %v3451_v33 = vmax.f32 %v3419_v55, 0.0 }
 0x22f   : > { %3485 = vst [vmem:[%s5915_s25 + $0xf8] sm:$0xff] %v3453_v28 }
 0x230   : > { %3483 = vst [vmem:[%s5915_s25 + $0xe8] sm:$0xff] %v3451_v33 }
 0x231 PF: > { %s14_s15 = sadd.s32 1, %s4868_s15  }
 0x232   : > { %p11_p4 = scmp.ge.s32.totalorder %s14_s15, 4  }
 0x234   :  { %13 = sbr.rel (!%p11_p4) target bundleno = 1 (0x1), region = 74 }

</bundles_post_ra>
